<compile_context>
chip_gen: v7x
topology: tpu7x:2x2x1
jax: 0.10.0
libtpu: 0.0.40
codegen_flags: <defaults>
</compile_context>

<pallas_src>
import numpy as np
import jax
import jax.numpy as jnp
from jax import lax
from jax.experimental import pallas as pl
from jax.experimental.pallas import tpu as pltpu

S, B = 8, 2            # sequence length, batch
D_MODEL = 32           # token_embedding.d_model
HIDDEN = 32            # hidden_size
NUM_TAGS = 8           # vocabulary_size (NER tag set)
TOKEN_VOCAB = 50       # token embedding vocabulary
TOK_PAD = 64           # padded rows of the pre-projected embedding table


# --------------------------------------------------------------------------
# Fused kernel: gather + merged BiLSTM recurrence + Linear (batch 0)
#               + Viterbi + backtrace
# --------------------------------------------------------------------------
def _ner_fused_kernel(src_ref, xproj_ref, whh_ref, wl_ref, bl_ref, trans_ref,
                      path_ref, logits_ref):
    f32 = jnp.float32
    H, V, seq = HIDDEN, NUM_TAGS, S

    # hoisted recurrent weights: block-diag (2H, 8H), bf16 MXU operand
    whh = whh_ref[...]

    # ---- (1) in-kernel gather of pre-projected input rows (batch 0 only) ----
    # token ids come from SMEM; each row already holds
    # [x@W_ih_f^T + b_f | x@W_ih_b^T + b_b]  (f32, (1, 8H))
    xg = []
    for t in range(seq):
        tok = src_ref[t, 0]                          # scalar int32 from SMEM
        xg.append(xproj_ref[pl.ds(tok, 1), :])       # dynamic (1, 8H) row load

    # ---- (2) merged fwd+bwd recurrence, fully unrolled (static indices) ----
    h_f = jnp.zeros((1, H), f32)
    c_f = jnp.zeros((1, H), f32)
    h_b = jnp.zeros((1, H), f32)
    c_b = jnp.zeros((1, H), f32)
    hf_pos = [None] * seq
    hb_pos = [None] * seq

    for t in range(seq):
        tb = seq - 1 - t
        # fused per-step input: fwd gates from time t, bwd gates from time tb
        xg_step = jnp.concatenate([xg[t][:, 0:4 * H], xg[tb][:, 4 * H:8 * H]],
                                  axis=1)                              # (1, 8H)
        h_cat = jnp.concatenate([h_f, h_b], axis=1).astype(jnp.bfloat16)
        # single MXU dot for BOTH directions (bf16 operands, f32 accumulate)
        gates = xg_step + jnp.dot(h_cat, whh, preferred_element_type=f32)
        sg = jax.nn.sigmoid(gates)   # one EUP pass over the full gate vector
        th = jnp.tanh(gates)         # one EUP pass over the full gate vector
        # PyTorch LSTM gate order: i, f, g, o  (per direction)
        i_f = sg[:, 0 * H:1 * H]
        f_f = sg[:, 1 * H:2 * H]
        g_f = th[:, 2 * H:3 * H]
        o_f = sg[:, 3 * H:4 * H]
        c_f = f_f * c_f + i_f * g_f
        h_f = o_f * jnp.tanh(c_f)
        i_b = sg[:, 4 * H:5 * H]
        f_b = sg[:, 5 * H:6 * H]
        g_b = th[:, 6 * H:7 * H]
        o_b = sg[:, 7 * H:8 * H]
        c_b = f_b * c_b + i_b * g_b
        h_b = o_b * jnp.tanh(c_b)
        hf_pos[t] = h_f      # forward hidden for sequence position t
        hb_pos[tb] = h_b     # backward hidden for sequence position tb

    # ---- (3) deferred Linear: single matmul on the assembled (S, 2H) rows ----
    hcat = jnp.concatenate(
        [jnp.concatenate([hf_pos[p], hb_pos[p]], axis=1) for p in range(seq)],
        axis=0)                                                        # (S, 2H)
    logits = (jnp.dot(hcat, wl_ref[...], preferred_element_type=f32)
              + bl_ref[...])                                           # (S, V)
    logits_ref[...] = logits

    # ---- (4) Viterbi recursion + backpointer walk, fully unrolled ----
    trans = trans_ref[...]                                             # (V, V)
    iota_k = lax.broadcasted_iota(jnp.int32, (V, V), 0)                # row (k)
    eye = iota_k == lax.broadcasted_iota(jnp.int32, (V, V), 1)
    iota_v = lax.broadcasted_iota(jnp.int32, (1, V), 1)
    iota_s = lax.broadcasted_iota(jnp.int32, (1, seq), 1)

    def row_to_col(row):   # (1, V) -> (V, 1) via masked lane reduce
        return jnp.sum(jnp.where(eye, row, jnp.zeros((V, V), row.dtype)),
                       axis=1, keepdims=True)

    opt_row = logits[0:1, :]                  # opt[0][j] = logits[0, j]
    opt_col = row_to_col(opt_row)
    bps = []                                  # traced (1, V) backpointer rows
    for i in range(1, seq):
        # scores[k, j] = (opt[i-1][k] + logits[i, j]) + trans[k, j]
        scores = (opt_col + logits[i:i + 1, :]) + trans
        best = jnp.max(scores, axis=0, keepdims=True)                  # (1, V)
        # first (smallest) k achieving the max == reference's strict ">" loop
        bp = jnp.min(jnp.where(scores == best, iota_k, V),
                     axis=0, keepdims=True).astype(jnp.int32)          # (1, V)
        bps.append(bp)
        opt_row = best
        if i < seq - 1:
            opt_col = row_to_col(best)

    # final arg-first-max over opt[S-1]; accumulate the path in a register
    max_v = jnp.max(opt_row, axis=1, keepdims=True)                    # (1, 1)
    idx = jnp.min(jnp.where(opt_row == max_v, iota_v, V),
                  axis=1, keepdims=True).astype(jnp.int32)             # (1, 1)
    path_row = jnp.where(iota_s == (seq - 1), idx,
                         jnp.zeros((1, seq), jnp.int32))
    onehot = iota_v == idx
    for i in range(seq - 2, -1, -1):
        idx = jnp.min(jnp.where(onehot, bps[i], V), axis=1, keepdims=True)
        path_row = jnp.where(iota_s == i, idx, path_row)
        onehot = iota_v == idx
    path_ref[...] = path_row      # single store for the whole decoded path


# --------------------------------------------------------------------------
# Wrappers
# --------------------------------------------------------------------------
_VMEM = pl.BlockSpec(memory_space=pltpu.MemorySpace.VMEM)
_SMEM = pl.BlockSpec(memory_space=pltpu.MemorySpace.SMEM)


def _fused_call():
    return pl.pallas_call(
        _ner_fused_kernel,
        out_shape=(jax.ShapeDtypeStruct((1, S), jnp.int32),            # path
                   jax.ShapeDtypeStruct((S, NUM_TAGS), jnp.float32)),  # logits b0
        in_specs=[_SMEM,   # source token ids (S, B) int32
                  _VMEM,   # pre-projected embedding table (TOK_PAD, 8H) f32
                  _VMEM,   # block-diag recurrent weights (2H, 8H) bf16
                  _VMEM,   # linear weight (2H, V) f32
                  _VMEM,   # linear bias (1, V) f32
                  _VMEM],  # transition (V, V) f32
        out_specs=(_VMEM, _VMEM),
    )


@jax.jit
def ner_device(source, kp):
    path_row, logits_b0 = _fused_call()(
        source, kp["xproj"], kp["whh_blk"], kp["wl"], kp["b_lin"],
        kp["transition"])
    return path_row.reshape(S), logits_b0


def ner_forward(source, kp):
    path, _ = jax.block_until_ready(ner_device(source, kp))
    return [int(t) for t in np.asarray(path)]


def init_params(key):
    ks = jax.random.split(key, 12)

    def u(k, shape, scale=0.1):
        return jax.random.uniform(k, shape, jnp.float32, -scale, scale)

    embed = u(ks[0], (TOKEN_VOCAB, D_MODEL), 1.0)
    # nn.LSTM parameter shapes: weight_ih (4H, D), weight_hh (4H, H), biases (4H,)
    wih_f = u(ks[1], (4 * HIDDEN, D_MODEL))
    whh_f = u(ks[2], (4 * HIDDEN, HIDDEN))
    bih_f = u(ks[3], (4 * HIDDEN,))
    bhh_f = u(ks[4], (4 * HIDDEN,))
    wih_b = u(ks[5], (4 * HIDDEN, D_MODEL))
    whh_b = u(ks[6], (4 * HIDDEN, HIDDEN))
    bih_b = u(ks[7], (4 * HIDDEN,))
    bhh_b = u(ks[8], (4 * HIDDEN,))
    # nn.Linear(hidden*2, vocab): weight (V, 2H), bias (V,)
    w_lin = u(ks[9], (NUM_TAGS, 2 * HIDDEN))
    b_lin = u(ks[10], (NUM_TAGS,))
    # nn.Parameter(torch.rand(V, V)) -> uniform [0, 1)
    transition = jax.random.uniform(ks[11], (NUM_TAGS, NUM_TAGS), jnp.float32)

    # ---- host-side (exact f32) parameter folding ----
    # token-embedding rows pre-projected through both directions' input weights,
    # with both LSTM biases folded in:  xproj[tok] = emb[tok]@Wih^T + b_ih + b_hh
    embed_np = np.asarray(embed, np.float32)
    wih_cat = np.concatenate([np.asarray(wih_f, np.float32).T,
                              np.asarray(wih_b, np.float32).T], axis=1)  # (D, 8H)
    b_cat = np.concatenate([np.asarray(bih_f) + np.asarray(bhh_f),
                            np.asarray(bih_b) + np.asarray(bhh_b)]
                           ).astype(np.float32)[None, :]                 # (1, 8H)
    xproj = embed_np @ wih_cat + b_cat                                   # (50, 8H)
    xproj = np.pad(xproj, ((0, TOK_PAD - TOKEN_VOCAB), (0, 0)))          # (64, 8H)

    # block-diagonal recurrent weights (2H, 8H): [h_f | h_b] @ blk -> all 8 gates
    whh_blk = np.zeros((2 * HIDDEN, 8 * HIDDEN), np.float32)
    whh_blk[:HIDDEN, :4 * HIDDEN] = np.asarray(whh_f, np.float32).T
    whh_blk[HIDDEN:, 4 * HIDDEN:] = np.asarray(whh_b, np.float32).T

    kp = {
        "xproj": jnp.asarray(xproj, jnp.float32),
        "whh_blk": jnp.asarray(whh_blk, jnp.bfloat16),    # bf16 MXU operand
        "wl": jnp.asarray(np.asarray(w_lin, np.float32).T, jnp.float32),  # (2H,V)
        "b_lin": jnp.asarray(np.asarray(b_lin, np.float32)[None, :]),     # (1,V)
        "transition": transition,                                          # (V,V)
    }
    raw = {k: np.asarray(v) for k, v in dict(
        embed=embed, wih_f=wih_f, whh_f=whh_f, bih_f=bih_f, bhh_f=bhh_f,
        wih_b=wih_b, whh_b=whh_b, bih_b=bih_b, bhh_b=bhh_b,
        w_lin=w_lin, b_lin=b_lin).items()}
    return kp, raw


# --------------------------------------------------------------------------
# Pure numpy reference (independent f32 formulation) used only for validation
# --------------------------------------------------------------------------
def _sigmoid(x):
    return 1.0 / (1.0 + np.exp(-x))


def ref_logits_batch0(source_np, raw):
    emb = raw["embed"][source_np]                      # (S, B, D) float32

    def run_dir(xs, w_ih, w_hh, b_ih, b_hh):
        Hh = w_hh.shape[1]
        h = np.zeros((B, Hh), np.float32)
        c = np.zeros_like(h)
        outs = []
        for t in range(xs.shape[0]):
            g = xs[t] @ w_ih.T + b_ih + h @ w_hh.T + b_hh
            i = _sigmoid(g[:, :Hh])
            f = _sigmoid(g[:, Hh:2 * Hh])
            gg = np.tanh(g[:, 2 * Hh:3 * Hh])
            o = _sigmoid(g[:, 3 * Hh:])
            c = f * c + i * gg
            h = o * np.tanh(c)
            outs.append(h)
        return np.stack(outs)                          # (S, B, H)

    hf = run_dir(emb, raw["wih_f"], raw["whh_f"], raw["bih_f"], raw["bhh_f"])
    hb = run_dir(emb[::-1], raw["wih_b"], raw["whh_b"],
                 raw["bih_b"], raw["bhh_b"])[::-1]
    hcat = np.concatenate([hf, hb], axis=-1)           # (S, B, 2H)
    logits = hcat @ raw["w_lin"].T + raw["b_lin"]      # (S, B, V)
    return logits[:, 0, :].astype(np.float32)


def ref_viterbi_decode(logits, trans):
    logits = np.asarray(logits, np.float32)
    trans = np.asarray(trans, np.float32)
    seq, v = logits.shape
    opt = logits[0].copy()
    path = np.zeros((seq - 1, v), np.int64)
    for i in range(1, seq):
        scores = (opt[:, None] + logits[i][None, :]) + trans   # (k, j) f32
        path[i - 1] = np.argmax(scores, axis=0)                # first max
        opt = scores.max(axis=0)
    ti = int(np.argmax(opt))                                   # first max
    tgt = [ti] * seq
    for i in reversed(range(seq - 1)):
        ti = int(path[i, ti])
        tgt[i] = ti
    return tgt


if __name__ == "__main__":
    key = jax.random.PRNGKey(0)
    pkey, skey = jax.random.split(key)
    kp, raw = init_params(pkey)
    source = jax.random.randint(skey, (S, B), 0, TOKEN_VOCAB, dtype=jnp.int32)

    path, logits_b0 = jax.block_until_ready(ner_device(source, kp))
    target = [int(t) for t in np.asarray(path)]

    # --- validation against a pure-numpy f32 reference ---
    # (tolerance covers the bf16 recurrent-matmul operands; elementwise math
    #  and the input projection / Linear remain f32)
    src_np = np.asarray(source)
    ref_lg = ref_logits_batch0(src_np, raw)
    kern_lg = np.asarray(logits_b0)
    err = float(np.max(np.abs(kern_lg - ref_lg)))
    assert err < 2e-2, f"logits mismatch, max abs err = {err}"
    # exact decode check: same f32 arithmetic order on the kernel's own logits
    ref_path = ref_viterbi_decode(kern_lg, np.asarray(kp["transition"]))
    assert target == ref_path, f"path mismatch: {target} vs {ref_path}"
    assert len(target) == S and all(0 <= t < NUM_TAGS for t in target)
    # TODO(synk): the reference returns a Python list; host-side int() cast only.
    print("KERNEL_OK")
</pallas_src>

<mosaic_0001>
module attributes {stable_mosaic.version = 11 : i64} {
  func.func @_ner_fused_kernel(%arg0: memref<8x2xi32, #tpu.memory_space<smem>>, %arg1: memref<64x256xf32, #tpu.memory_space<vmem>>, %arg2: memref<64x256xbf16, #tpu.memory_space<vmem>>, %arg3: memref<64x8xf32, #tpu.memory_space<vmem>>, %arg4: memref<1x8xf32, #tpu.memory_space<vmem>>, %arg5: memref<8x8xf32, #tpu.memory_space<vmem>>, %arg6: memref<1x8xi32, #tpu.memory_space<vmem>>, %arg7: memref<8x8xf32, #tpu.memory_space<vmem>>) attributes {dimension_semantics = [], scalar_prefetch = 0 : i64, scratch_operands = 0 : i64, tpu.core_type = #tpu.core_type<tc>} {
    %c0 = arith.constant 0 : index
    %c0_0 = arith.constant 0 : index
    %0 = vector.load %arg2[%c0, %c0_0] : memref<64x256xbf16, #tpu.memory_space<vmem>>, vector<64x256xbf16>
    %c0_1 = arith.constant 0 : index
    %c0_2 = arith.constant 0 : index
    %1 = memref.load %arg0[%c0_1, %c0_2] : memref<8x2xi32, #tpu.memory_space<smem>>
    %2 = arith.index_cast %1 : i32 to index
    %c0_3 = arith.constant 0 : index
    %3 = vector.load %arg1[%2, %c0_3] : memref<64x256xf32, #tpu.memory_space<vmem>>, vector<1x256xf32>
    %c1 = arith.constant 1 : index
    %c0_4 = arith.constant 0 : index
    %4 = memref.load %arg0[%c1, %c0_4] : memref<8x2xi32, #tpu.memory_space<smem>>
    %5 = arith.index_cast %4 : i32 to index
    %c0_5 = arith.constant 0 : index
    %6 = vector.load %arg1[%5, %c0_5] : memref<64x256xf32, #tpu.memory_space<vmem>>, vector<1x256xf32>
    %c2 = arith.constant 2 : index
    %c0_6 = arith.constant 0 : index
    %7 = memref.load %arg0[%c2, %c0_6] : memref<8x2xi32, #tpu.memory_space<smem>>
    %8 = arith.index_cast %7 : i32 to index
    %c0_7 = arith.constant 0 : index
    %9 = vector.load %arg1[%8, %c0_7] : memref<64x256xf32, #tpu.memory_space<vmem>>, vector<1x256xf32>
    %c3 = arith.constant 3 : index
    %c0_8 = arith.constant 0 : index
    %10 = memref.load %arg0[%c3, %c0_8] : memref<8x2xi32, #tpu.memory_space<smem>>
    %11 = arith.index_cast %10 : i32 to index
    %c0_9 = arith.constant 0 : index
    %12 = vector.load %arg1[%11, %c0_9] : memref<64x256xf32, #tpu.memory_space<vmem>>, vector<1x256xf32>
    %c4 = arith.constant 4 : index
    %c0_10 = arith.constant 0 : index
    %13 = memref.load %arg0[%c4, %c0_10] : memref<8x2xi32, #tpu.memory_space<smem>>
    %14 = arith.index_cast %13 : i32 to index
    %c0_11 = arith.constant 0 : index
    %15 = vector.load %arg1[%14, %c0_11] : memref<64x256xf32, #tpu.memory_space<vmem>>, vector<1x256xf32>
    %c5 = arith.constant 5 : index
    %c0_12 = arith.constant 0 : index
    %16 = memref.load %arg0[%c5, %c0_12] : memref<8x2xi32, #tpu.memory_space<smem>>
    %17 = arith.index_cast %16 : i32 to index
    %c0_13 = arith.constant 0 : index
    %18 = vector.load %arg1[%17, %c0_13] : memref<64x256xf32, #tpu.memory_space<vmem>>, vector<1x256xf32>
    %c6 = arith.constant 6 : index
    %c0_14 = arith.constant 0 : index
    %19 = memref.load %arg0[%c6, %c0_14] : memref<8x2xi32, #tpu.memory_space<smem>>
    %20 = arith.index_cast %19 : i32 to index
    %c0_15 = arith.constant 0 : index
    %21 = vector.load %arg1[%20, %c0_15] : memref<64x256xf32, #tpu.memory_space<vmem>>, vector<1x256xf32>
    %c7 = arith.constant 7 : index
    %c0_16 = arith.constant 0 : index
    %22 = memref.load %arg0[%c7, %c0_16] : memref<8x2xi32, #tpu.memory_space<smem>>
    %23 = arith.index_cast %22 : i32 to index
    %c0_17 = arith.constant 0 : index
    %24 = vector.load %arg1[%23, %c0_17] : memref<64x256xf32, #tpu.memory_space<vmem>>, vector<1x256xf32>
    %cst = arith.constant 0.000000e+00 : f32
    %25 = vector.broadcast %cst : f32 to vector<1x32xf32>
    %cst_18 = arith.constant 0.000000e+00 : f32
    %26 = vector.broadcast %cst_18 : f32 to vector<1x32xf32>
    %cst_19 = arith.constant 0.000000e+00 : f32
    %27 = vector.broadcast %cst_19 : f32 to vector<1x32xf32>
    %cst_20 = arith.constant 0.000000e+00 : f32
    %28 = vector.broadcast %cst_20 : f32 to vector<1x32xf32>
    %29 = vector.extract_strided_slice %3 {offsets = [0, 0], sizes = [1, 128], strides = [1, 1]} : vector<1x256xf32> to vector<1x128xf32>
    %30 = vector.extract_strided_slice %24 {offsets = [0, 128], sizes = [1, 128], strides = [1, 1]} : vector<1x256xf32> to vector<1x128xf32>
    %31 = tpu.concatenate %29, %30 in 1 : vector<1x128xf32>, vector<1x128xf32> -> vector<1x256xf32>
    %32 = tpu.concatenate %25, %27 in 1 : vector<1x32xf32>, vector<1x32xf32> -> vector<1x64xf32>
    %33 = arith.truncf %32 : vector<1x64xf32> to vector<1x64xbf16>
    %cst_21 = arith.constant dense<0.000000e+00> : vector<1x256xf32>
    %34 = tpu.matmul %33, %0, %cst_21 {dimension_numbers = #tpu.dot_dimension_numbers<[1], [0], [0], [1], [0, 0, 1, 1], [], []>} : vector<1x64xbf16>, vector<64x256xbf16>, vector<1x256xf32> -> vector<1x256xf32>
    %35 = arith.addf %31, %34 : vector<1x256xf32>
    %36 = arith.negf %35 : vector<1x256xf32>
    %37 = math.exp %36 : vector<1x256xf32>
    %cst_22 = arith.constant 1.000000e+00 : f32
    %38 = vector.broadcast %cst_22 : f32 to vector<1x256xf32>
    %39 = arith.addf %38, %37 : vector<1x256xf32>
    %40 = arith.divf %38, %39 : vector<1x256xf32>
    %41 = math.tanh %35 : vector<1x256xf32>
    %42 = vector.extract_strided_slice %40 {offsets = [0, 0], sizes = [1, 32], strides = [1, 1]} : vector<1x256xf32> to vector<1x32xf32>
    %43 = vector.extract_strided_slice %40 {offsets = [0, 32], sizes = [1, 32], strides = [1, 1]} : vector<1x256xf32> to vector<1x32xf32>
    %44 = vector.extract_strided_slice %41 {offsets = [0, 64], sizes = [1, 32], strides = [1, 1]} : vector<1x256xf32> to vector<1x32xf32>
    %45 = vector.extract_strided_slice %40 {offsets = [0, 96], sizes = [1, 32], strides = [1, 1]} : vector<1x256xf32> to vector<1x32xf32>
    %46 = arith.mulf %43, %26 : vector<1x32xf32>
    %47 = arith.mulf %42, %44 : vector<1x32xf32>
    %48 = arith.addf %46, %47 : vector<1x32xf32>
    %49 = math.tanh %48 : vector<1x32xf32>
    %50 = arith.mulf %45, %49 : vector<1x32xf32>
    %51 = vector.extract_strided_slice %40 {offsets = [0, 128], sizes = [1, 32], strides = [1, 1]} : vector<1x256xf32> to vector<1x32xf32>
    %52 = vector.extract_strided_slice %40 {offsets = [0, 160], sizes = [1, 32], strides = [1, 1]} : vector<1x256xf32> to vector<1x32xf32>
    %53 = vector.extract_strided_slice %41 {offsets = [0, 192], sizes = [1, 32], strides = [1, 1]} : vector<1x256xf32> to vector<1x32xf32>
    %54 = vector.extract_strided_slice %40 {offsets = [0, 224], sizes = [1, 32], strides = [1, 1]} : vector<1x256xf32> to vector<1x32xf32>
    %55 = arith.mulf %52, %28 : vector<1x32xf32>
    %56 = arith.mulf %51, %53 : vector<1x32xf32>
    %57 = arith.addf %55, %56 : vector<1x32xf32>
    %58 = math.tanh %57 : vector<1x32xf32>
    %59 = arith.mulf %54, %58 : vector<1x32xf32>
    %60 = vector.extract_strided_slice %6 {offsets = [0, 0], sizes = [1, 128], strides = [1, 1]} : vector<1x256xf32> to vector<1x128xf32>
    %61 = vector.extract_strided_slice %21 {offsets = [0, 128], sizes = [1, 128], strides = [1, 1]} : vector<1x256xf32> to vector<1x128xf32>
    %62 = tpu.concatenate %60, %61 in 1 : vector<1x128xf32>, vector<1x128xf32> -> vector<1x256xf32>
    %63 = tpu.concatenate %50, %59 in 1 : vector<1x32xf32>, vector<1x32xf32> -> vector<1x64xf32>
    %64 = arith.truncf %63 : vector<1x64xf32> to vector<1x64xbf16>
    %cst_23 = arith.constant dense<0.000000e+00> : vector<1x256xf32>
    %65 = tpu.matmul %64, %0, %cst_23 {dimension_numbers = #tpu.dot_dimension_numbers<[1], [0], [0], [1], [0, 0, 1, 1], [], []>} : vector<1x64xbf16>, vector<64x256xbf16>, vector<1x256xf32> -> vector<1x256xf32>
    %66 = arith.addf %62, %65 : vector<1x256xf32>
    %67 = arith.negf %66 : vector<1x256xf32>
    %68 = math.exp %67 : vector<1x256xf32>
    %cst_24 = arith.constant 1.000000e+00 : f32
    %69 = vector.broadcast %cst_24 : f32 to vector<1x256xf32>
    %70 = arith.addf %69, %68 : vector<1x256xf32>
    %71 = arith.divf %69, %70 : vector<1x256xf32>
    %72 = math.tanh %66 : vector<1x256xf32>
    %73 = vector.extract_strided_slice %71 {offsets = [0, 0], sizes = [1, 32], strides = [1, 1]} : vector<1x256xf32> to vector<1x32xf32>
    %74 = vector.extract_strided_slice %71 {offsets = [0, 32], sizes = [1, 32], strides = [1, 1]} : vector<1x256xf32> to vector<1x32xf32>
    %75 = vector.extract_strided_slice %72 {offsets = [0, 64], sizes = [1, 32], strides = [1, 1]} : vector<1x256xf32> to vector<1x32xf32>
    %76 = vector.extract_strided_slice %71 {offsets = [0, 96], sizes = [1, 32], strides = [1, 1]} : vector<1x256xf32> to vector<1x32xf32>
    %77 = arith.mulf %74, %48 : vector<1x32xf32>
    %78 = arith.mulf %73, %75 : vector<1x32xf32>
    %79 = arith.addf %77, %78 : vector<1x32xf32>
    %80 = math.tanh %79 : vector<1x32xf32>
    %81 = arith.mulf %76, %80 : vector<1x32xf32>
    %82 = vector.extract_strided_slice %71 {offsets = [0, 128], sizes = [1, 32], strides = [1, 1]} : vector<1x256xf32> to vector<1x32xf32>
    %83 = vector.extract_strided_slice %71 {offsets = [0, 160], sizes = [1, 32], strides = [1, 1]} : vector<1x256xf32> to vector<1x32xf32>
    %84 = vector.extract_strided_slice %72 {offsets = [0, 192], sizes = [1, 32], strides = [1, 1]} : vector<1x256xf32> to vector<1x32xf32>
    %85 = vector.extract_strided_slice %71 {offsets = [0, 224], sizes = [1, 32], strides = [1, 1]} : vector<1x256xf32> to vector<1x32xf32>
    %86 = arith.mulf %83, %57 : vector<1x32xf32>
    %87 = arith.mulf %82, %84 : vector<1x32xf32>
    %88 = arith.addf %86, %87 : vector<1x32xf32>
    %89 = math.tanh %88 : vector<1x32xf32>
    %90 = arith.mulf %85, %89 : vector<1x32xf32>
    %91 = vector.extract_strided_slice %9 {offsets = [0, 0], sizes = [1, 128], strides = [1, 1]} : vector<1x256xf32> to vector<1x128xf32>
    %92 = vector.extract_strided_slice %18 {offsets = [0, 128], sizes = [1, 128], strides = [1, 1]} : vector<1x256xf32> to vector<1x128xf32>
    %93 = tpu.concatenate %91, %92 in 1 : vector<1x128xf32>, vector<1x128xf32> -> vector<1x256xf32>
    %94 = tpu.concatenate %81, %90 in 1 : vector<1x32xf32>, vector<1x32xf32> -> vector<1x64xf32>
    %95 = arith.truncf %94 : vector<1x64xf32> to vector<1x64xbf16>
    %cst_25 = arith.constant dense<0.000000e+00> : vector<1x256xf32>
    %96 = tpu.matmul %95, %0, %cst_25 {dimension_numbers = #tpu.dot_dimension_numbers<[1], [0], [0], [1], [0, 0, 1, 1], [], []>} : vector<1x64xbf16>, vector<64x256xbf16>, vector<1x256xf32> -> vector<1x256xf32>
    %97 = arith.addf %93, %96 : vector<1x256xf32>
    %98 = arith.negf %97 : vector<1x256xf32>
    %99 = math.exp %98 : vector<1x256xf32>
    %cst_26 = arith.constant 1.000000e+00 : f32
    %100 = vector.broadcast %cst_26 : f32 to vector<1x256xf32>
    %101 = arith.addf %100, %99 : vector<1x256xf32>
    %102 = arith.divf %100, %101 : vector<1x256xf32>
    %103 = math.tanh %97 : vector<1x256xf32>
    %104 = vector.extract_strided_slice %102 {offsets = [0, 0], sizes = [1, 32], strides = [1, 1]} : vector<1x256xf32> to vector<1x32xf32>
    %105 = vector.extract_strided_slice %102 {offsets = [0, 32], sizes = [1, 32], strides = [1, 1]} : vector<1x256xf32> to vector<1x32xf32>
    %106 = vector.extract_strided_slice %103 {offsets = [0, 64], sizes = [1, 32], strides = [1, 1]} : vector<1x256xf32> to vector<1x32xf32>
    %107 = vector.extract_strided_slice %102 {offsets = [0, 96], sizes = [1, 32], strides = [1, 1]} : vector<1x256xf32> to vector<1x32xf32>
    %108 = arith.mulf %105, %79 : vector<1x32xf32>
    %109 = arith.mulf %104, %106 : vector<1x32xf32>
    %110 = arith.addf %108, %109 : vector<1x32xf32>
    %111 = math.tanh %110 : vector<1x32xf32>
    %112 = arith.mulf %107, %111 : vector<1x32xf32>
    %113 = vector.extract_strided_slice %102 {offsets = [0, 128], sizes = [1, 32], strides = [1, 1]} : vector<1x256xf32> to vector<1x32xf32>
    %114 = vector.extract_strided_slice %102 {offsets = [0, 160], sizes = [1, 32], strides = [1, 1]} : vector<1x256xf32> to vector<1x32xf32>
    %115 = vector.extract_strided_slice %103 {offsets = [0, 192], sizes = [1, 32], strides = [1, 1]} : vector<1x256xf32> to vector<1x32xf32>
    %116 = vector.extract_strided_slice %102 {offsets = [0, 224], sizes = [1, 32], strides = [1, 1]} : vector<1x256xf32> to vector<1x32xf32>
    %117 = arith.mulf %114, %88 : vector<1x32xf32>
    %118 = arith.mulf %113, %115 : vector<1x32xf32>
    %119 = arith.addf %117, %118 : vector<1x32xf32>
    %120 = math.tanh %119 : vector<1x32xf32>
    %121 = arith.mulf %116, %120 : vector<1x32xf32>
    %122 = vector.extract_strided_slice %12 {offsets = [0, 0], sizes = [1, 128], strides = [1, 1]} : vector<1x256xf32> to vector<1x128xf32>
    %123 = vector.extract_strided_slice %15 {offsets = [0, 128], sizes = [1, 128], strides = [1, 1]} : vector<1x256xf32> to vector<1x128xf32>
    %124 = tpu.concatenate %122, %123 in 1 : vector<1x128xf32>, vector<1x128xf32> -> vector<1x256xf32>
    %125 = tpu.concatenate %112, %121 in 1 : vector<1x32xf32>, vector<1x32xf32> -> vector<1x64xf32>
    %126 = arith.truncf %125 : vector<1x64xf32> to vector<1x64xbf16>
    %cst_27 = arith.constant dense<0.000000e+00> : vector<1x256xf32>
    %127 = tpu.matmul %126, %0, %cst_27 {dimension_numbers = #tpu.dot_dimension_numbers<[1], [0], [0], [1], [0, 0, 1, 1], [], []>} : vector<1x64xbf16>, vector<64x256xbf16>, vector<1x256xf32> -> vector<1x256xf32>
    %128 = arith.addf %124, %127 : vector<1x256xf32>
    %129 = arith.negf %128 : vector<1x256xf32>
    %130 = math.exp %129 : vector<1x256xf32>
    %cst_28 = arith.constant 1.000000e+00 : f32
    %131 = vector.broadcast %cst_28 : f32 to vector<1x256xf32>
    %132 = arith.addf %131, %130 : vector<1x256xf32>
    %133 = arith.divf %131, %132 : vector<1x256xf32>
    %134 = math.tanh %128 : vector<1x256xf32>
    %135 = vector.extract_strided_slice %133 {offsets = [0, 0], sizes = [1, 32], strides = [1, 1]} : vector<1x256xf32> to vector<1x32xf32>
    %136 = vector.extract_strided_slice %133 {offsets = [0, 32], sizes = [1, 32], strides = [1, 1]} : vector<1x256xf32> to vector<1x32xf32>
    %137 = vector.extract_strided_slice %134 {offsets = [0, 64], sizes = [1, 32], strides = [1, 1]} : vector<1x256xf32> to vector<1x32xf32>
    %138 = vector.extract_strided_slice %133 {offsets = [0, 96], sizes = [1, 32], strides = [1, 1]} : vector<1x256xf32> to vector<1x32xf32>
    %139 = arith.mulf %136, %110 : vector<1x32xf32>
    %140 = arith.mulf %135, %137 : vector<1x32xf32>
    %141 = arith.addf %139, %140 : vector<1x32xf32>
    %142 = math.tanh %141 : vector<1x32xf32>
    %143 = arith.mulf %138, %142 : vector<1x32xf32>
    %144 = vector.extract_strided_slice %133 {offsets = [0, 128], sizes = [1, 32], strides = [1, 1]} : vector<1x256xf32> to vector<1x32xf32>
    %145 = vector.extract_strided_slice %133 {offsets = [0, 160], sizes = [1, 32], strides = [1, 1]} : vector<1x256xf32> to vector<1x32xf32>
    %146 = vector.extract_strided_slice %134 {offsets = [0, 192], sizes = [1, 32], strides = [1, 1]} : vector<1x256xf32> to vector<1x32xf32>
    %147 = vector.extract_strided_slice %133 {offsets = [0, 224], sizes = [1, 32], strides = [1, 1]} : vector<1x256xf32> to vector<1x32xf32>
    %148 = arith.mulf %145, %119 : vector<1x32xf32>
    %149 = arith.mulf %144, %146 : vector<1x32xf32>
    %150 = arith.addf %148, %149 : vector<1x32xf32>
    %151 = math.tanh %150 : vector<1x32xf32>
    %152 = arith.mulf %147, %151 : vector<1x32xf32>
    %153 = vector.extract_strided_slice %15 {offsets = [0, 0], sizes = [1, 128], strides = [1, 1]} : vector<1x256xf32> to vector<1x128xf32>
    %154 = vector.extract_strided_slice %12 {offsets = [0, 128], sizes = [1, 128], strides = [1, 1]} : vector<1x256xf32> to vector<1x128xf32>
    %155 = tpu.concatenate %153, %154 in 1 : vector<1x128xf32>, vector<1x128xf32> -> vector<1x256xf32>
    %156 = tpu.concatenate %143, %152 in 1 : vector<1x32xf32>, vector<1x32xf32> -> vector<1x64xf32>
    %157 = arith.truncf %156 : vector<1x64xf32> to vector<1x64xbf16>
    %cst_29 = arith.constant dense<0.000000e+00> : vector<1x256xf32>
    %158 = tpu.matmul %157, %0, %cst_29 {dimension_numbers = #tpu.dot_dimension_numbers<[1], [0], [0], [1], [0, 0, 1, 1], [], []>} : vector<1x64xbf16>, vector<64x256xbf16>, vector<1x256xf32> -> vector<1x256xf32>
    %159 = arith.addf %155, %158 : vector<1x256xf32>
    %160 = arith.negf %159 : vector<1x256xf32>
    %161 = math.exp %160 : vector<1x256xf32>
    %cst_30 = arith.constant 1.000000e+00 : f32
    %162 = vector.broadcast %cst_30 : f32 to vector<1x256xf32>
    %163 = arith.addf %162, %161 : vector<1x256xf32>
    %164 = arith.divf %162, %163 : vector<1x256xf32>
    %165 = math.tanh %159 : vector<1x256xf32>
    %166 = vector.extract_strided_slice %164 {offsets = [0, 0], sizes = [1, 32], strides = [1, 1]} : vector<1x256xf32> to vector<1x32xf32>
    %167 = vector.extract_strided_slice %164 {offsets = [0, 32], sizes = [1, 32], strides = [1, 1]} : vector<1x256xf32> to vector<1x32xf32>
    %168 = vector.extract_strided_slice %165 {offsets = [0, 64], sizes = [1, 32], strides = [1, 1]} : vector<1x256xf32> to vector<1x32xf32>
    %169 = vector.extract_strided_slice %164 {offsets = [0, 96], sizes = [1, 32], strides = [1, 1]} : vector<1x256xf32> to vector<1x32xf32>
    %170 = arith.mulf %167, %141 : vector<1x32xf32>
    %171 = arith.mulf %166, %168 : vector<1x32xf32>
    %172 = arith.addf %170, %171 : vector<1x32xf32>
    %173 = math.tanh %172 : vector<1x32xf32>
    %174 = arith.mulf %169, %173 : vector<1x32xf32>
    %175 = vector.extract_strided_slice %164 {offsets = [0, 128], sizes = [1, 32], strides = [1, 1]} : vector<1x256xf32> to vector<1x32xf32>
    %176 = vector.extract_strided_slice %164 {offsets = [0, 160], sizes = [1, 32], strides = [1, 1]} : vector<1x256xf32> to vector<1x32xf32>
    %177 = vector.extract_strided_slice %165 {offsets = [0, 192], sizes = [1, 32], strides = [1, 1]} : vector<1x256xf32> to vector<1x32xf32>
    %178 = vector.extract_strided_slice %164 {offsets = [0, 224], sizes = [1, 32], strides = [1, 1]} : vector<1x256xf32> to vector<1x32xf32>
    %179 = arith.mulf %176, %150 : vector<1x32xf32>
    %180 = arith.mulf %175, %177 : vector<1x32xf32>
    %181 = arith.addf %179, %180 : vector<1x32xf32>
    %182 = math.tanh %181 : vector<1x32xf32>
    %183 = arith.mulf %178, %182 : vector<1x32xf32>
    %184 = vector.extract_strided_slice %18 {offsets = [0, 0], sizes = [1, 128], strides = [1, 1]} : vector<1x256xf32> to vector<1x128xf32>
    %185 = vector.extract_strided_slice %9 {offsets = [0, 128], sizes = [1, 128], strides = [1, 1]} : vector<1x256xf32> to vector<1x128xf32>
    %186 = tpu.concatenate %184, %185 in 1 : vector<1x128xf32>, vector<1x128xf32> -> vector<1x256xf32>
    %187 = tpu.concatenate %174, %183 in 1 : vector<1x32xf32>, vector<1x32xf32> -> vector<1x64xf32>
    %188 = arith.truncf %187 : vector<1x64xf32> to vector<1x64xbf16>
    %cst_31 = arith.constant dense<0.000000e+00> : vector<1x256xf32>
    %189 = tpu.matmul %188, %0, %cst_31 {dimension_numbers = #tpu.dot_dimension_numbers<[1], [0], [0], [1], [0, 0, 1, 1], [], []>} : vector<1x64xbf16>, vector<64x256xbf16>, vector<1x256xf32> -> vector<1x256xf32>
    %190 = arith.addf %186, %189 : vector<1x256xf32>
    %191 = arith.negf %190 : vector<1x256xf32>
    %192 = math.exp %191 : vector<1x256xf32>
    %cst_32 = arith.constant 1.000000e+00 : f32
    %193 = vector.broadcast %cst_32 : f32 to vector<1x256xf32>
    %194 = arith.addf %193, %192 : vector<1x256xf32>
    %195 = arith.divf %193, %194 : vector<1x256xf32>
    %196 = math.tanh %190 : vector<1x256xf32>
    %197 = vector.extract_strided_slice %195 {offsets = [0, 0], sizes = [1, 32], strides = [1, 1]} : vector<1x256xf32> to vector<1x32xf32>
    %198 = vector.extract_strided_slice %195 {offsets = [0, 32], sizes = [1, 32], strides = [1, 1]} : vector<1x256xf32> to vector<1x32xf32>
    %199 = vector.extract_strided_slice %196 {offsets = [0, 64], sizes = [1, 32], strides = [1, 1]} : vector<1x256xf32> to vector<1x32xf32>
    %200 = vector.extract_strided_slice %195 {offsets = [0, 96], sizes = [1, 32], strides = [1, 1]} : vector<1x256xf32> to vector<1x32xf32>
    %201 = arith.mulf %198, %172 : vector<1x32xf32>
    %202 = arith.mulf %197, %199 : vector<1x32xf32>
    %203 = arith.addf %201, %202 : vector<1x32xf32>
    %204 = math.tanh %203 : vector<1x32xf32>
    %205 = arith.mulf %200, %204 : vector<1x32xf32>
    %206 = vector.extract_strided_slice %195 {offsets = [0, 128], sizes = [1, 32], strides = [1, 1]} : vector<1x256xf32> to vector<1x32xf32>
    %207 = vector.extract_strided_slice %195 {offsets = [0, 160], sizes = [1, 32], strides = [1, 1]} : vector<1x256xf32> to vector<1x32xf32>
    %208 = vector.extract_strided_slice %196 {offsets = [0, 192], sizes = [1, 32], strides = [1, 1]} : vector<1x256xf32> to vector<1x32xf32>
    %209 = vector.extract_strided_slice %195 {offsets = [0, 224], sizes = [1, 32], strides = [1, 1]} : vector<1x256xf32> to vector<1x32xf32>
    %210 = arith.mulf %207, %181 : vector<1x32xf32>
    %211 = arith.mulf %206, %208 : vector<1x32xf32>
    %212 = arith.addf %210, %211 : vector<1x32xf32>
    %213 = math.tanh %212 : vector<1x32xf32>
    %214 = arith.mulf %209, %213 : vector<1x32xf32>
    %215 = vector.extract_strided_slice %21 {offsets = [0, 0], sizes = [1, 128], strides = [1, 1]} : vector<1x256xf32> to vector<1x128xf32>
    %216 = vector.extract_strided_slice %6 {offsets = [0, 128], sizes = [1, 128], strides = [1, 1]} : vector<1x256xf32> to vector<1x128xf32>
    %217 = tpu.concatenate %215, %216 in 1 : vector<1x128xf32>, vector<1x128xf32> -> vector<1x256xf32>
    %218 = tpu.concatenate %205, %214 in 1 : vector<1x32xf32>, vector<1x32xf32> -> vector<1x64xf32>
    %219 = arith.truncf %218 : vector<1x64xf32> to vector<1x64xbf16>
    %cst_33 = arith.constant dense<0.000000e+00> : vector<1x256xf32>
    %220 = tpu.matmul %219, %0, %cst_33 {dimension_numbers = #tpu.dot_dimension_numbers<[1], [0], [0], [1], [0, 0, 1, 1], [], []>} : vector<1x64xbf16>, vector<64x256xbf16>, vector<1x256xf32> -> vector<1x256xf32>
    %221 = arith.addf %217, %220 : vector<1x256xf32>
    %222 = arith.negf %221 : vector<1x256xf32>
    %223 = math.exp %222 : vector<1x256xf32>
    %cst_34 = arith.constant 1.000000e+00 : f32
    %224 = vector.broadcast %cst_34 : f32 to vector<1x256xf32>
    %225 = arith.addf %224, %223 : vector<1x256xf32>
    %226 = arith.divf %224, %225 : vector<1x256xf32>
    %227 = math.tanh %221 : vector<1x256xf32>
    %228 = vector.extract_strided_slice %226 {offsets = [0, 0], sizes = [1, 32], strides = [1, 1]} : vector<1x256xf32> to vector<1x32xf32>
    %229 = vector.extract_strided_slice %226 {offsets = [0, 32], sizes = [1, 32], strides = [1, 1]} : vector<1x256xf32> to vector<1x32xf32>
    %230 = vector.extract_strided_slice %227 {offsets = [0, 64], sizes = [1, 32], strides = [1, 1]} : vector<1x256xf32> to vector<1x32xf32>
    %231 = vector.extract_strided_slice %226 {offsets = [0, 96], sizes = [1, 32], strides = [1, 1]} : vector<1x256xf32> to vector<1x32xf32>
    %232 = arith.mulf %229, %203 : vector<1x32xf32>
    %233 = arith.mulf %228, %230 : vector<1x32xf32>
    %234 = arith.addf %232, %233 : vector<1x32xf32>
    %235 = math.tanh %234 : vector<1x32xf32>
    %236 = arith.mulf %231, %235 : vector<1x32xf32>
    %237 = vector.extract_strided_slice %226 {offsets = [0, 128], sizes = [1, 32], strides = [1, 1]} : vector<1x256xf32> to vector<1x32xf32>
    %238 = vector.extract_strided_slice %226 {offsets = [0, 160], sizes = [1, 32], strides = [1, 1]} : vector<1x256xf32> to vector<1x32xf32>
    %239 = vector.extract_strided_slice %227 {offsets = [0, 192], sizes = [1, 32], strides = [1, 1]} : vector<1x256xf32> to vector<1x32xf32>
    %240 = vector.extract_strided_slice %226 {offsets = [0, 224], sizes = [1, 32], strides = [1, 1]} : vector<1x256xf32> to vector<1x32xf32>
    %241 = arith.mulf %238, %212 : vector<1x32xf32>
    %242 = arith.mulf %237, %239 : vector<1x32xf32>
    %243 = arith.addf %241, %242 : vector<1x32xf32>
    %244 = math.tanh %243 : vector<1x32xf32>
    %245 = arith.mulf %240, %244 : vector<1x32xf32>
    %246 = vector.extract_strided_slice %24 {offsets = [0, 0], sizes = [1, 128], strides = [1, 1]} : vector<1x256xf32> to vector<1x128xf32>
    %247 = vector.extract_strided_slice %3 {offsets = [0, 128], sizes = [1, 128], strides = [1, 1]} : vector<1x256xf32> to vector<1x128xf32>
    %248 = tpu.concatenate %246, %247 in 1 : vector<1x128xf32>, vector<1x128xf32> -> vector<1x256xf32>
    %249 = tpu.concatenate %236, %245 in 1 : vector<1x32xf32>, vector<1x32xf32> -> vector<1x64xf32>
    %250 = arith.truncf %249 : vector<1x64xf32> to vector<1x64xbf16>
    %cst_35 = arith.constant dense<0.000000e+00> : vector<1x256xf32>
    %251 = tpu.matmul %250, %0, %cst_35 {dimension_numbers = #tpu.dot_dimension_numbers<[1], [0], [0], [1], [0, 0, 1, 1], [], []>} : vector<1x64xbf16>, vector<64x256xbf16>, vector<1x256xf32> -> vector<1x256xf32>
    %252 = arith.addf %248, %251 : vector<1x256xf32>
    %253 = arith.negf %252 : vector<1x256xf32>
    %254 = math.exp %253 : vector<1x256xf32>
    %cst_36 = arith.constant 1.000000e+00 : f32
    %255 = vector.broadcast %cst_36 : f32 to vector<1x256xf32>
    %256 = arith.addf %255, %254 : vector<1x256xf32>
    %257 = arith.divf %255, %256 : vector<1x256xf32>
    %258 = math.tanh %252 : vector<1x256xf32>
    %259 = vector.extract_strided_slice %257 {offsets = [0, 0], sizes = [1, 32], strides = [1, 1]} : vector<1x256xf32> to vector<1x32xf32>
    %260 = vector.extract_strided_slice %257 {offsets = [0, 32], sizes = [1, 32], strides = [1, 1]} : vector<1x256xf32> to vector<1x32xf32>
    %261 = vector.extract_strided_slice %258 {offsets = [0, 64], sizes = [1, 32], strides = [1, 1]} : vector<1x256xf32> to vector<1x32xf32>
    %262 = vector.extract_strided_slice %257 {offsets = [0, 96], sizes = [1, 32], strides = [1, 1]} : vector<1x256xf32> to vector<1x32xf32>
    %263 = arith.mulf %260, %234 : vector<1x32xf32>
    %264 = arith.mulf %259, %261 : vector<1x32xf32>
    %265 = arith.addf %263, %264 : vector<1x32xf32>
    %266 = math.tanh %265 : vector<1x32xf32>
    %267 = arith.mulf %262, %266 : vector<1x32xf32>
    %268 = vector.extract_strided_slice %257 {offsets = [0, 128], sizes = [1, 32], strides = [1, 1]} : vector<1x256xf32> to vector<1x32xf32>
    %269 = vector.extract_strided_slice %257 {offsets = [0, 160], sizes = [1, 32], strides = [1, 1]} : vector<1x256xf32> to vector<1x32xf32>
    %270 = vector.extract_strided_slice %258 {offsets = [0, 192], sizes = [1, 32], strides = [1, 1]} : vector<1x256xf32> to vector<1x32xf32>
    %271 = vector.extract_strided_slice %257 {offsets = [0, 224], sizes = [1, 32], strides = [1, 1]} : vector<1x256xf32> to vector<1x32xf32>
    %272 = arith.mulf %269, %243 : vector<1x32xf32>
    %273 = arith.mulf %268, %270 : vector<1x32xf32>
    %274 = arith.addf %272, %273 : vector<1x32xf32>
    %275 = math.tanh %274 : vector<1x32xf32>
    %276 = arith.mulf %271, %275 : vector<1x32xf32>
    %277 = tpu.concatenate %50, %276 in 1 : vector<1x32xf32>, vector<1x32xf32> -> vector<1x64xf32>
    %278 = tpu.concatenate %81, %245 in 1 : vector<1x32xf32>, vector<1x32xf32> -> vector<1x64xf32>
    %279 = tpu.concatenate %112, %214 in 1 : vector<1x32xf32>, vector<1x32xf32> -> vector<1x64xf32>
    %280 = tpu.concatenate %143, %183 in 1 : vector<1x32xf32>, vector<1x32xf32> -> vector<1x64xf32>
    %281 = tpu.concatenate %174, %152 in 1 : vector<1x32xf32>, vector<1x32xf32> -> vector<1x64xf32>
    %282 = tpu.concatenate %205, %121 in 1 : vector<1x32xf32>, vector<1x32xf32> -> vector<1x64xf32>
    %283 = tpu.concatenate %236, %90 in 1 : vector<1x32xf32>, vector<1x32xf32> -> vector<1x64xf32>
    %284 = tpu.concatenate %267, %59 in 1 : vector<1x32xf32>, vector<1x32xf32> -> vector<1x64xf32>
    %285 = tpu.concatenate %277, %278, %279, %280, %281, %282, %283, %284 in 0 : vector<1x64xf32>, vector<1x64xf32>, vector<1x64xf32>, vector<1x64xf32>, vector<1x64xf32>, vector<1x64xf32>, vector<1x64xf32>, vector<1x64xf32> -> vector<8x64xf32>
    %c0_37 = arith.constant 0 : index
    %c0_38 = arith.constant 0 : index
    %286 = vector.load %arg3[%c0_37, %c0_38] : memref<64x8xf32, #tpu.memory_space<vmem>>, vector<64x8xf32>
    %cst_39 = arith.constant dense<0.000000e+00> : vector<8x8xf32>
    %287 = tpu.matmul %285, %286, %cst_39 {dimension_numbers = #tpu.dot_dimension_numbers<[1], [0], [0], [1], [0, 0, 1, 1], [], []>} : vector<8x64xf32>, vector<64x8xf32>, vector<8x8xf32> -> vector<8x8xf32>
    %c0_40 = arith.constant 0 : index
    %c0_41 = arith.constant 0 : index
    %288 = vector.load %arg4[%c0_40, %c0_41] : memref<1x8xf32, #tpu.memory_space<vmem>>, vector<1x8xf32>
    %289 = vector.broadcast %288 : vector<1x8xf32> to vector<8x8xf32>
    %290 = arith.addf %287, %289 : vector<8x8xf32>
    %c0_42 = arith.constant 0 : index
    %c0_43 = arith.constant 0 : index
    %291 = vector.load %arg7[%c0_42, %c0_43] : memref<8x8xf32, #tpu.memory_space<vmem>>, vector<8x8xf32>
    tpu.vector_store %arg7[%c0_42, %c0_43], %290 {strides = array<i32>} : memref<8x8xf32, #tpu.memory_space<vmem>>, vector<8x8xf32>,
    %c0_44 = arith.constant 0 : index
    %c0_45 = arith.constant 0 : index
    %292 = vector.load %arg5[%c0_44, %c0_45] : memref<8x8xf32, #tpu.memory_space<vmem>>, vector<8x8xf32>
    %293 = tpu.iota {dimensions = array<i32: 0>} : vector<8x8xi32>
    %294 = tpu.iota {dimensions = array<i32: 1>} : vector<8x8xi32>
    %295 = arith.cmpi eq, %293, %294 : vector<8x8xi32>
    %296 = tpu.iota {dimensions = array<i32: 1>} : vector<1x8xi32>
    %297 = tpu.iota {dimensions = array<i32: 1>} : vector<1x8xi32>
    %298 = vector.extract_strided_slice %290 {offsets = [0, 0], sizes = [1, 8], strides = [1, 1]} : vector<8x8xf32> to vector<1x8xf32>
    %cst_46 = arith.constant 0.000000e+00 : f32
    %299 = vector.broadcast %cst_46 : f32 to vector<8x8xf32>
    %300 = vector.shape_cast %298 : vector<1x8xf32> to vector<1x8xf32>
    %301 = vector.broadcast %300 : vector<1x8xf32> to vector<8x8xf32>
    %302 = arith.select %295, %301, %299 : vector<8x8xi1>, vector<8x8xf32>
    %cst_47 = arith.constant dense<0.000000e+00> : vector<8xf32>
    %303 = vector.multi_reduction <add>, %302, %cst_47 [1] : vector<8x8xf32> to vector<8xf32>
    %304 = vector.shape_cast %303 : vector<8xf32> to vector<8x1xf32>
    %305 = vector.extract_strided_slice %290 {offsets = [1, 0], sizes = [1, 8], strides = [1, 1]} : vector<8x8xf32> to vector<1x8xf32>
    %306 = vector.broadcast %304 : vector<8x1xf32> to vector<8x8xf32>
    %307 = vector.broadcast %305 : vector<1x8xf32> to vector<8x8xf32>
    %308 = arith.addf %306, %307 : vector<8x8xf32>
    %309 = arith.addf %308, %292 : vector<8x8xf32>
    %cst_48 = arith.constant dense<0xFF800000> : vector<8xf32>
    %310 = vector.multi_reduction <maximumf>, %309, %cst_48 [0] : vector<8x8xf32> to vector<8xf32>
    %311 = vector.shape_cast %310 : vector<8xf32> to vector<1x8xf32>
    %312 = vector.broadcast %311 : vector<1x8xf32> to vector<8x8xf32>
    %313 = arith.cmpf oeq, %309, %312 : vector<8x8xf32>
    %c8_i32 = arith.constant 8 : i32
    %314 = vector.broadcast %c8_i32 : i32 to vector<8x8xi32>
    %315 = arith.select %313, %293, %314 : vector<8x8xi1>, vector<8x8xi32>
    %cst_49 = arith.constant dense<2147483647> : vector<8xi32>
    %316 = vector.multi_reduction <minsi>, %315, %cst_49 [0] : vector<8x8xi32> to vector<8xi32>
    %317 = vector.shape_cast %316 : vector<8xi32> to vector<1x8xi32>
    %cst_50 = arith.constant 0.000000e+00 : f32
    %318 = vector.broadcast %cst_50 : f32 to vector<8x8xf32>
    %319 = vector.shape_cast %311 : vector<1x8xf32> to vector<1x8xf32>
    %320 = vector.broadcast %319 : vector<1x8xf32> to vector<8x8xf32>
    %321 = arith.select %295, %320, %318 : vector<8x8xi1>, vector<8x8xf32>
    %cst_51 = arith.constant dense<0.000000e+00> : vector<8xf32>
    %322 = vector.multi_reduction <add>, %321, %cst_51 [1] : vector<8x8xf32> to vector<8xf32>
    %323 = vector.shape_cast %322 : vector<8xf32> to vector<8x1xf32>
    %324 = vector.extract_strided_slice %290 {offsets = [2, 0], sizes = [1, 8], strides = [1, 1]} : vector<8x8xf32> to vector<1x8xf32>
    %325 = vector.broadcast %323 : vector<8x1xf32> to vector<8x8xf32>
    %326 = vector.broadcast %324 : vector<1x8xf32> to vector<8x8xf32>
    %327 = arith.addf %325, %326 : vector<8x8xf32>
    %328 = arith.addf %327, %292 : vector<8x8xf32>
    %cst_52 = arith.constant dense<0xFF800000> : vector<8xf32>
    %329 = vector.multi_reduction <maximumf>, %328, %cst_52 [0] : vector<8x8xf32> to vector<8xf32>
    %330 = vector.shape_cast %329 : vector<8xf32> to vector<1x8xf32>
    %331 = vector.broadcast %330 : vector<1x8xf32> to vector<8x8xf32>
    %332 = arith.cmpf oeq, %328, %331 : vector<8x8xf32>
    %c8_i32_53 = arith.constant 8 : i32
    %333 = vector.broadcast %c8_i32_53 : i32 to vector<8x8xi32>
    %334 = arith.select %332, %293, %333 : vector<8x8xi1>, vector<8x8xi32>
    %cst_54 = arith.constant dense<2147483647> : vector<8xi32>
    %335 = vector.multi_reduction <minsi>, %334, %cst_54 [0] : vector<8x8xi32> to vector<8xi32>
    %336 = vector.shape_cast %335 : vector<8xi32> to vector<1x8xi32>
    %cst_55 = arith.constant 0.000000e+00 : f32
    %337 = vector.broadcast %cst_55 : f32 to vector<8x8xf32>
    %338 = vector.shape_cast %330 : vector<1x8xf32> to vector<1x8xf32>
    %339 = vector.broadcast %338 : vector<1x8xf32> to vector<8x8xf32>
    %340 = arith.select %295, %339, %337 : vector<8x8xi1>, vector<8x8xf32>
    %cst_56 = arith.constant dense<0.000000e+00> : vector<8xf32>
    %341 = vector.multi_reduction <add>, %340, %cst_56 [1] : vector<8x8xf32> to vector<8xf32>
    %342 = vector.shape_cast %341 : vector<8xf32> to vector<8x1xf32>
    %343 = vector.extract_strided_slice %290 {offsets = [3, 0], sizes = [1, 8], strides = [1, 1]} : vector<8x8xf32> to vector<1x8xf32>
    %344 = vector.broadcast %342 : vector<8x1xf32> to vector<8x8xf32>
    %345 = vector.broadcast %343 : vector<1x8xf32> to vector<8x8xf32>
    %346 = arith.addf %344, %345 : vector<8x8xf32>
    %347 = arith.addf %346, %292 : vector<8x8xf32>
    %cst_57 = arith.constant dense<0xFF800000> : vector<8xf32>
    %348 = vector.multi_reduction <maximumf>, %347, %cst_57 [0] : vector<8x8xf32> to vector<8xf32>
    %349 = vector.shape_cast %348 : vector<8xf32> to vector<1x8xf32>
    %350 = vector.broadcast %349 : vector<1x8xf32> to vector<8x8xf32>
    %351 = arith.cmpf oeq, %347, %350 : vector<8x8xf32>
    %c8_i32_58 = arith.constant 8 : i32
    %352 = vector.broadcast %c8_i32_58 : i32 to vector<8x8xi32>
    %353 = arith.select %351, %293, %352 : vector<8x8xi1>, vector<8x8xi32>
    %cst_59 = arith.constant dense<2147483647> : vector<8xi32>
    %354 = vector.multi_reduction <minsi>, %353, %cst_59 [0] : vector<8x8xi32> to vector<8xi32>
    %355 = vector.shape_cast %354 : vector<8xi32> to vector<1x8xi32>
    %cst_60 = arith.constant 0.000000e+00 : f32
    %356 = vector.broadcast %cst_60 : f32 to vector<8x8xf32>
    %357 = vector.shape_cast %349 : vector<1x8xf32> to vector<1x8xf32>
    %358 = vector.broadcast %357 : vector<1x8xf32> to vector<8x8xf32>
    %359 = arith.select %295, %358, %356 : vector<8x8xi1>, vector<8x8xf32>
    %cst_61 = arith.constant dense<0.000000e+00> : vector<8xf32>
    %360 = vector.multi_reduction <add>, %359, %cst_61 [1] : vector<8x8xf32> to vector<8xf32>
    %361 = vector.shape_cast %360 : vector<8xf32> to vector<8x1xf32>
    %362 = vector.extract_strided_slice %290 {offsets = [4, 0], sizes = [1, 8], strides = [1, 1]} : vector<8x8xf32> to vector<1x8xf32>
    %363 = vector.broadcast %361 : vector<8x1xf32> to vector<8x8xf32>
    %364 = vector.broadcast %362 : vector<1x8xf32> to vector<8x8xf32>
    %365 = arith.addf %363, %364 : vector<8x8xf32>
    %366 = arith.addf %365, %292 : vector<8x8xf32>
    %cst_62 = arith.constant dense<0xFF800000> : vector<8xf32>
    %367 = vector.multi_reduction <maximumf>, %366, %cst_62 [0] : vector<8x8xf32> to vector<8xf32>
    %368 = vector.shape_cast %367 : vector<8xf32> to vector<1x8xf32>
    %369 = vector.broadcast %368 : vector<1x8xf32> to vector<8x8xf32>
    %370 = arith.cmpf oeq, %366, %369 : vector<8x8xf32>
    %c8_i32_63 = arith.constant 8 : i32
    %371 = vector.broadcast %c8_i32_63 : i32 to vector<8x8xi32>
    %372 = arith.select %370, %293, %371 : vector<8x8xi1>, vector<8x8xi32>
    %cst_64 = arith.constant dense<2147483647> : vector<8xi32>
    %373 = vector.multi_reduction <minsi>, %372, %cst_64 [0] : vector<8x8xi32> to vector<8xi32>
    %374 = vector.shape_cast %373 : vector<8xi32> to vector<1x8xi32>
    %cst_65 = arith.constant 0.000000e+00 : f32
    %375 = vector.broadcast %cst_65 : f32 to vector<8x8xf32>
    %376 = vector.shape_cast %368 : vector<1x8xf32> to vector<1x8xf32>
    %377 = vector.broadcast %376 : vector<1x8xf32> to vector<8x8xf32>
    %378 = arith.select %295, %377, %375 : vector<8x8xi1>, vector<8x8xf32>
    %cst_66 = arith.constant dense<0.000000e+00> : vector<8xf32>
    %379 = vector.multi_reduction <add>, %378, %cst_66 [1] : vector<8x8xf32> to vector<8xf32>
    %380 = vector.shape_cast %379 : vector<8xf32> to vector<8x1xf32>
    %381 = vector.extract_strided_slice %290 {offsets = [5, 0], sizes = [1, 8], strides = [1, 1]} : vector<8x8xf32> to vector<1x8xf32>
    %382 = vector.broadcast %380 : vector<8x1xf32> to vector<8x8xf32>
    %383 = vector.broadcast %381 : vector<1x8xf32> to vector<8x8xf32>
    %384 = arith.addf %382, %383 : vector<8x8xf32>
    %385 = arith.addf %384, %292 : vector<8x8xf32>
    %cst_67 = arith.constant dense<0xFF800000> : vector<8xf32>
    %386 = vector.multi_reduction <maximumf>, %385, %cst_67 [0] : vector<8x8xf32> to vector<8xf32>
    %387 = vector.shape_cast %386 : vector<8xf32> to vector<1x8xf32>
    %388 = vector.broadcast %387 : vector<1x8xf32> to vector<8x8xf32>
    %389 = arith.cmpf oeq, %385, %388 : vector<8x8xf32>
    %c8_i32_68 = arith.constant 8 : i32
    %390 = vector.broadcast %c8_i32_68 : i32 to vector<8x8xi32>
    %391 = arith.select %389, %293, %390 : vector<8x8xi1>, vector<8x8xi32>
    %cst_69 = arith.constant dense<2147483647> : vector<8xi32>
    %392 = vector.multi_reduction <minsi>, %391, %cst_69 [0] : vector<8x8xi32> to vector<8xi32>
    %393 = vector.shape_cast %392 : vector<8xi32> to vector<1x8xi32>
    %cst_70 = arith.constant 0.000000e+00 : f32
    %394 = vector.broadcast %cst_70 : f32 to vector<8x8xf32>
    %395 = vector.shape_cast %387 : vector<1x8xf32> to vector<1x8xf32>
    %396 = vector.broadcast %395 : vector<1x8xf32> to vector<8x8xf32>
    %397 = arith.select %295, %396, %394 : vector<8x8xi1>, vector<8x8xf32>
    %cst_71 = arith.constant dense<0.000000e+00> : vector<8xf32>
    %398 = vector.multi_reduction <add>, %397, %cst_71 [1] : vector<8x8xf32> to vector<8xf32>
    %399 = vector.shape_cast %398 : vector<8xf32> to vector<8x1xf32>
    %400 = vector.extract_strided_slice %290 {offsets = [6, 0], sizes = [1, 8], strides = [1, 1]} : vector<8x8xf32> to vector<1x8xf32>
    %401 = vector.broadcast %399 : vector<8x1xf32> to vector<8x8xf32>
    %402 = vector.broadcast %400 : vector<1x8xf32> to vector<8x8xf32>
    %403 = arith.addf %401, %402 : vector<8x8xf32>
    %404 = arith.addf %403, %292 : vector<8x8xf32>
    %cst_72 = arith.constant dense<0xFF800000> : vector<8xf32>
    %405 = vector.multi_reduction <maximumf>, %404, %cst_72 [0] : vector<8x8xf32> to vector<8xf32>
    %406 = vector.shape_cast %405 : vector<8xf32> to vector<1x8xf32>
    %407 = vector.broadcast %406 : vector<1x8xf32> to vector<8x8xf32>
    %408 = arith.cmpf oeq, %404, %407 : vector<8x8xf32>
    %c8_i32_73 = arith.constant 8 : i32
    %409 = vector.broadcast %c8_i32_73 : i32 to vector<8x8xi32>
    %410 = arith.select %408, %293, %409 : vector<8x8xi1>, vector<8x8xi32>
    %cst_74 = arith.constant dense<2147483647> : vector<8xi32>
    %411 = vector.multi_reduction <minsi>, %410, %cst_74 [0] : vector<8x8xi32> to vector<8xi32>
    %412 = vector.shape_cast %411 : vector<8xi32> to vector<1x8xi32>
    %cst_75 = arith.constant 0.000000e+00 : f32
    %413 = vector.broadcast %cst_75 : f32 to vector<8x8xf32>
    %414 = vector.shape_cast %406 : vector<1x8xf32> to vector<1x8xf32>
    %415 = vector.broadcast %414 : vector<1x8xf32> to vector<8x8xf32>
    %416 = arith.select %295, %415, %413 : vector<8x8xi1>, vector<8x8xf32>
    %cst_76 = arith.constant dense<0.000000e+00> : vector<8xf32>
    %417 = vector.multi_reduction <add>, %416, %cst_76 [1] : vector<8x8xf32> to vector<8xf32>
    %418 = vector.shape_cast %417 : vector<8xf32> to vector<8x1xf32>
    %419 = vector.extract_strided_slice %290 {offsets = [7, 0], sizes = [1, 8], strides = [1, 1]} : vector<8x8xf32> to vector<1x8xf32>
    %420 = vector.broadcast %418 : vector<8x1xf32> to vector<8x8xf32>
    %421 = vector.broadcast %419 : vector<1x8xf32> to vector<8x8xf32>
    %422 = arith.addf %420, %421 : vector<8x8xf32>
    %423 = arith.addf %422, %292 : vector<8x8xf32>
    %cst_77 = arith.constant dense<0xFF800000> : vector<8xf32>
    %424 = vector.multi_reduction <maximumf>, %423, %cst_77 [0] : vector<8x8xf32> to vector<8xf32>
    %425 = vector.shape_cast %424 : vector<8xf32> to vector<1x8xf32>
    %426 = vector.broadcast %425 : vector<1x8xf32> to vector<8x8xf32>
    %427 = arith.cmpf oeq, %423, %426 : vector<8x8xf32>
    %c8_i32_78 = arith.constant 8 : i32
    %428 = vector.broadcast %c8_i32_78 : i32 to vector<8x8xi32>
    %429 = arith.select %427, %293, %428 : vector<8x8xi1>, vector<8x8xi32>
    %cst_79 = arith.constant dense<2147483647> : vector<8xi32>
    %430 = vector.multi_reduction <minsi>, %429, %cst_79 [0] : vector<8x8xi32> to vector<8xi32>
    %431 = vector.shape_cast %430 : vector<8xi32> to vector<1x8xi32>
    %cst_80 = arith.constant dense<0xFF800000> : vector<1xf32>
    %432 = vector.multi_reduction <maximumf>, %425, %cst_80 [1] : vector<1x8xf32> to vector<1xf32>
    %433 = vector.shape_cast %432 : vector<1xf32> to vector<1x1xf32>
    %434 = vector.broadcast %433 : vector<1x1xf32> to vector<1x8xf32>
    %435 = arith.cmpf oeq, %425, %434 : vector<1x8xf32>
    %c8_i32_81 = arith.constant 8 : i32
    %436 = vector.broadcast %c8_i32_81 : i32 to vector<1x8xi32>
    %437 = arith.select %435, %296, %436 : vector<1x8xi1>, vector<1x8xi32>
    %cst_82 = arith.constant dense<2147483647> : vector<1xi32>
    %438 = vector.multi_reduction <minsi>, %437, %cst_82 [1] : vector<1x8xi32> to vector<1xi32>
    %439 = vector.shape_cast %438 : vector<1xi32> to vector<1x1xi32>
    %c7_i32 = arith.constant 7 : i32
    %440 = vector.broadcast %c7_i32 : i32 to vector<1x8xi32>
    %441 = arith.cmpi eq, %297, %440 : vector<1x8xi32>
    %c0_i32 = arith.constant 0 : i32
    %442 = vector.broadcast %c0_i32 : i32 to vector<1x8xi32>
    %443 = vector.shape_cast %439 : vector<1x1xi32> to vector<1x1xi32>
    %444 = vector.broadcast %443 : vector<1x1xi32> to vector<1x8xi32>
    %445 = arith.select %441, %444, %442 : vector<1x8xi1>, vector<1x8xi32>
    %446 = vector.broadcast %439 : vector<1x1xi32> to vector<1x8xi32>
    %447 = arith.cmpi eq, %296, %446 : vector<1x8xi32>
    %c8_i32_83 = arith.constant 8 : i32
    %448 = vector.broadcast %c8_i32_83 : i32 to vector<1x8xi32>
    %449 = arith.select %447, %431, %448 : vector<1x8xi1>, vector<1x8xi32>
    %cst_84 = arith.constant dense<2147483647> : vector<1xi32>
    %450 = vector.multi_reduction <minsi>, %449, %cst_84 [1] : vector<1x8xi32> to vector<1xi32>
    %451 = vector.shape_cast %450 : vector<1xi32> to vector<1x1xi32>
    %c6_i32 = arith.constant 6 : i32
    %452 = vector.broadcast %c6_i32 : i32 to vector<1x8xi32>
    %453 = arith.cmpi eq, %297, %452 : vector<1x8xi32>
    %454 = vector.shape_cast %451 : vector<1x1xi32> to vector<1x1xi32>
    %455 = vector.broadcast %454 : vector<1x1xi32> to vector<1x8xi32>
    %456 = arith.select %453, %455, %445 : vector<1x8xi1>, vector<1x8xi32>
    %457 = vector.broadcast %451 : vector<1x1xi32> to vector<1x8xi32>
    %458 = arith.cmpi eq, %296, %457 : vector<1x8xi32>
    %c8_i32_85 = arith.constant 8 : i32
    %459 = vector.broadcast %c8_i32_85 : i32 to vector<1x8xi32>
    %460 = arith.select %458, %412, %459 : vector<1x8xi1>, vector<1x8xi32>
    %cst_86 = arith.constant dense<2147483647> : vector<1xi32>
    %461 = vector.multi_reduction <minsi>, %460, %cst_86 [1] : vector<1x8xi32> to vector<1xi32>
    %462 = vector.shape_cast %461 : vector<1xi32> to vector<1x1xi32>
    %c5_i32 = arith.constant 5 : i32
    %463 = vector.broadcast %c5_i32 : i32 to vector<1x8xi32>
    %464 = arith.cmpi eq, %297, %463 : vector<1x8xi32>
    %465 = vector.shape_cast %462 : vector<1x1xi32> to vector<1x1xi32>
    %466 = vector.broadcast %465 : vector<1x1xi32> to vector<1x8xi32>
    %467 = arith.select %464, %466, %456 : vector<1x8xi1>, vector<1x8xi32>
    %468 = vector.broadcast %462 : vector<1x1xi32> to vector<1x8xi32>
    %469 = arith.cmpi eq, %296, %468 : vector<1x8xi32>
    %c8_i32_87 = arith.constant 8 : i32
    %470 = vector.broadcast %c8_i32_87 : i32 to vector<1x8xi32>
    %471 = arith.select %469, %393, %470 : vector<1x8xi1>, vector<1x8xi32>
    %cst_88 = arith.constant dense<2147483647> : vector<1xi32>
    %472 = vector.multi_reduction <minsi>, %471, %cst_88 [1] : vector<1x8xi32> to vector<1xi32>
    %473 = vector.shape_cast %472 : vector<1xi32> to vector<1x1xi32>
    %c4_i32 = arith.constant 4 : i32
    %474 = vector.broadcast %c4_i32 : i32 to vector<1x8xi32>
    %475 = arith.cmpi eq, %297, %474 : vector<1x8xi32>
    %476 = vector.shape_cast %473 : vector<1x1xi32> to vector<1x1xi32>
    %477 = vector.broadcast %476 : vector<1x1xi32> to vector<1x8xi32>
    %478 = arith.select %475, %477, %467 : vector<1x8xi1>, vector<1x8xi32>
    %479 = vector.broadcast %473 : vector<1x1xi32> to vector<1x8xi32>
    %480 = arith.cmpi eq, %296, %479 : vector<1x8xi32>
    %c8_i32_89 = arith.constant 8 : i32
    %481 = vector.broadcast %c8_i32_89 : i32 to vector<1x8xi32>
    %482 = arith.select %480, %374, %481 : vector<1x8xi1>, vector<1x8xi32>
    %cst_90 = arith.constant dense<2147483647> : vector<1xi32>
    %483 = vector.multi_reduction <minsi>, %482, %cst_90 [1] : vector<1x8xi32> to vector<1xi32>
    %484 = vector.shape_cast %483 : vector<1xi32> to vector<1x1xi32>
    %c3_i32 = arith.constant 3 : i32
    %485 = vector.broadcast %c3_i32 : i32 to vector<1x8xi32>
    %486 = arith.cmpi eq, %297, %485 : vector<1x8xi32>
    %487 = vector.shape_cast %484 : vector<1x1xi32> to vector<1x1xi32>
    %488 = vector.broadcast %487 : vector<1x1xi32> to vector<1x8xi32>
    %489 = arith.select %486, %488, %478 : vector<1x8xi1>, vector<1x8xi32>
    %490 = vector.broadcast %484 : vector<1x1xi32> to vector<1x8xi32>
    %491 = arith.cmpi eq, %296, %490 : vector<1x8xi32>
    %c8_i32_91 = arith.constant 8 : i32
    %492 = vector.broadcast %c8_i32_91 : i32 to vector<1x8xi32>
    %493 = arith.select %491, %355, %492 : vector<1x8xi1>, vector<1x8xi32>
    %cst_92 = arith.constant dense<2147483647> : vector<1xi32>
    %494 = vector.multi_reduction <minsi>, %493, %cst_92 [1] : vector<1x8xi32> to vector<1xi32>
    %495 = vector.shape_cast %494 : vector<1xi32> to vector<1x1xi32>
    %c2_i32 = arith.constant 2 : i32
    %496 = vector.broadcast %c2_i32 : i32 to vector<1x8xi32>
    %497 = arith.cmpi eq, %297, %496 : vector<1x8xi32>
    %498 = vector.shape_cast %495 : vector<1x1xi32> to vector<1x1xi32>
    %499 = vector.broadcast %498 : vector<1x1xi32> to vector<1x8xi32>
    %500 = arith.select %497, %499, %489 : vector<1x8xi1>, vector<1x8xi32>
    %501 = vector.broadcast %495 : vector<1x1xi32> to vector<1x8xi32>
    %502 = arith.cmpi eq, %296, %501 : vector<1x8xi32>
    %c8_i32_93 = arith.constant 8 : i32
    %503 = vector.broadcast %c8_i32_93 : i32 to vector<1x8xi32>
    %504 = arith.select %502, %336, %503 : vector<1x8xi1>, vector<1x8xi32>
    %cst_94 = arith.constant dense<2147483647> : vector<1xi32>
    %505 = vector.multi_reduction <minsi>, %504, %cst_94 [1] : vector<1x8xi32> to vector<1xi32>
    %506 = vector.shape_cast %505 : vector<1xi32> to vector<1x1xi32>
    %c1_i32 = arith.constant 1 : i32
    %507 = vector.broadcast %c1_i32 : i32 to vector<1x8xi32>
    %508 = arith.cmpi eq, %297, %507 : vector<1x8xi32>
    %509 = vector.shape_cast %506 : vector<1x1xi32> to vector<1x1xi32>
    %510 = vector.broadcast %509 : vector<1x1xi32> to vector<1x8xi32>
    %511 = arith.select %508, %510, %500 : vector<1x8xi1>, vector<1x8xi32>
    %512 = vector.broadcast %506 : vector<1x1xi32> to vector<1x8xi32>
    %513 = arith.cmpi eq, %296, %512 : vector<1x8xi32>
    %c8_i32_95 = arith.constant 8 : i32
    %514 = vector.broadcast %c8_i32_95 : i32 to vector<1x8xi32>
    %515 = arith.select %513, %317, %514 : vector<1x8xi1>, vector<1x8xi32>
    %cst_96 = arith.constant dense<2147483647> : vector<1xi32>
    %516 = vector.multi_reduction <minsi>, %515, %cst_96 [1] : vector<1x8xi32> to vector<1xi32>
    %517 = vector.shape_cast %516 : vector<1xi32> to vector<1x1xi32>
    %c0_i32_97 = arith.constant 0 : i32
    %518 = vector.broadcast %c0_i32_97 : i32 to vector<1x8xi32>
    %519 = arith.cmpi eq, %297, %518 : vector<1x8xi32>
    %520 = vector.shape_cast %517 : vector<1x1xi32> to vector<1x1xi32>
    %521 = vector.broadcast %520 : vector<1x1xi32> to vector<1x8xi32>
    %522 = arith.select %519, %521, %511 : vector<1x8xi1>, vector<1x8xi32>
    %c0_98 = arith.constant 0 : index
    %c0_99 = arith.constant 0 : index
    %523 = vector.load %arg6[%c0_98, %c0_99] : memref<1x8xi32, #tpu.memory_space<vmem>>, vector<1x8xi32>
    tpu.vector_store %arg6[%c0_98, %c0_99], %522 {strides = array<i32>} : memref<1x8xi32, #tpu.memory_space<vmem>>, vector<1x8xi32>,
    return
  }
}

</mosaic_0001>

<bundles_post_ra>
// kernel: ner_device.1
= control target key start
LH: loop header
LB: loop body
LE: loop exit
PB: predicated region body
PF: predicated region fallthrough
CT: control target
= control target key end

     0   :  { %13 = vsyncpa [#allocation5], 0  ;;  %s2580_s0 = inlined_call_operand.vmem [shape: s32[8,2], index: 0, kind: input, shape index: {}]   ;;  %s2581_s1 = inlined_call_operand.hbm [shape: f32[64,256], index: 1, kind: input, shape index: {}]   ;;  %s2582_s2 = inlined_call_operand.vmem [shape: bf16[64,256], index: 2, kind: input, shape index: {}]   ;;  %s2583_s3 = inlined_call_operand.vmem [shape: f32[64,8], index: 3, kind: input, shape index: {}]   ;;  %s2584_s4 = inlined_call_operand.vmem [shape: f32[1,8], index: 4, kind: input, shape index: {}]   ;;  %s2585_s5 = inlined_call_operand.vmem [shape: f32[8,8], index: 5, kind: input, shape index: {}]   ;;  %s2586_s6 = inlined_call_operand.hbm [shape: s32[1,8], index: 6, kind: output, shape index: {0}]   ;;  %s2587_s7 = inlined_call_operand.hbm [shape: f32[8,8], index: 7, kind: output, shape index: {1}]  }
   0x1   :  { %14 = vsyncpa [#allocation3], 0 }
   0x2   :  { %15 = vsyncpa [#allocation4], 0 }
   0x3   :  { %16 = vsyncpa [#allocation9], 0  ;;  %s23_s26 = sshll.u32 %s2580_s0, 4  ;;  %s24_s26 = int_to_ptr.vmem [resolvable:$true] %s23_s26 }
   0x4   :  { %s1877_s27 = scalar_lea.vmem %s24_s26, 128  ;;  %p1882_p1 = scmp.lt.s32.totalorder %s24_s26, %s24_s26 }
   0x5   :  { %p1878_p0 = scmp.ne.s32.totalorder %s24_s26, %s1877_s27  ;;  %p1883_p2 = scmp.lt.s32.totalorder %s1877_s27, %s1877_s27 }
   0x7   :  { %p1884_p3 = por %p1883_p2, %p1882_p1 }
   0x9   :  { %p1885_p4 = pnand %p1884_p3, %p1878_p0 }
   0xb   :  { %1888 = shalt.err (!%p1885_p4)
}
   0xc   :  { %s1963_s28 = smov [#allocation2]   ;;  %s1964_s29 = smov [#allocation6]  }
   0xd   :  { %26 = dma.vmem_to_smem %s24_s26, 128, %s1963_s28, [#allocation5]  }
   0xe   :  { %s32_s30 = sshll.u32 %s1964_s29, 4  ;;  %s1889_s10 = scalar_lea.hbm %s2581_s1, 2048  ;;  %s33_s30 = int_to_ptr.vmem [resolvable:$true] %s32_s30 }
   0xf   :  { %p1890_p5 = scmp.ne.s32.totalorder %s2581_s1, %s1889_s10  ;;  %p1893_p6 = scmp.lt.u32.totalorder %s1889_s10, %s2581_s1 }
  0x11   :  { %p1895_p7 = pnand %p1893_p6, %p1890_p5 }
  0x13   :  { %1898 = shalt.err (!%p1895_p7)
}
  0x14   :  { %s1899_s14 = scalar_lea.vmem %s33_s30, 2048  ;;  %p1904_p9 = scmp.lt.s32.totalorder %s33_s30, %s33_s30 }
  0x15   :  { %p1900_p8 = scmp.ne.s32.totalorder %s33_s30, %s1899_s14  ;;  %p1905_p10 = scmp.lt.s32.totalorder %s1899_s14, %s1899_s14 }
  0x17   :  { %p1906_p11 = por %p1905_p10, %p1904_p9 }
  0x19   :  { %p1907_p12 = pnand %p1906_p11, %p1900_p8 }
  0x1b   :  { %1910 = shalt.err (!%p1907_p12)
}
  0x1c   :  { %s1965_s15 = smov 256   ;;  %s1966_s16 = smov 16  }
  0x1d   :  { %38 = dma.hbm_to_vmem [thread:$0]  %s2581_s1, 2048, %s33_s30, [#allocation3], %s1965_s15, %s1965_s15, %s1966_s16  }
  0x1e   :  { %1955 = dma.done.wait [#allocation5], 128  }
  0x1f   :  { %1956 = vsyncadd [#allocation5], 4294967168 }
  0x20   :  { %1957 = dma.done.wait [#allocation3], 2048  }
  0x21   :  { %1958 = vsyncadd [#allocation3], 4294965248 }
  0x22   :  { %53 = sfence }
  0x23   :  { %v2033_v0 = vld [vmem:[%s2582_s2 + $0x4] ss:$8 sps:$4 sm:$0xff]   ;;  %v2038_v1 = vld [vmem:[%s2582_s2] ss:$8 sps:$4 sm:$0xff]   ;;  %v1967_v2 = vmov 0   ;;  %v1968_v9 = vmov 0.0|0.0   ;;  %v144_v10 = vlaneseq }
  0x24   :  { %226 = vmatprep.mubr.bf16.mxu0 %v1967_v2  ;;  %337 = vmatprep.mubr.bf16.mxu1 %v1967_v2  ;;  %v2046_v3 = vld [vmem:[%s2582_s2 + $0x14] ss:$8 sps:$4 sm:$0xff]   ;;  %v2053_v4 = vld [vmem:[%s2582_s2 + $0x10] ss:$8 sps:$4 sm:$0xff]   ;;  %v2060_v5 = vld [vmem:[%s2582_s2 + $0x24] ss:$8 sps:$4 sm:$0xff]  }
  0x25   :  { %194 = vmatprep.subr.bf16.mxu0 %v2033_v0  ;;  %305 = vmatprep.subr.bf16.mxu1 %v2033_v0  ;;  %v2067_v6 = vld [vmem:[%s2582_s2 + $0x20] ss:$8 sps:$4 sm:$0xff]   ;;  %v2074_v7 = vld [vmem:[%s2582_s2 + $0x34] ss:$8 sps:$4 sm:$0xff]   ;;  %v2081_v8 = vld [vmem:[%s2582_s2 + $0x30] ss:$8 sps:$4 sm:$0xff]  }
  0x26   :  { %195 = vmatpush1.bf16.msra.mxu0 %v2038_v1  ;;  %306 = vmatpush1.bf16.msra.mxu1 %v2038_v1  ;;  %s1641_s2 = sld [smem:[#allocation2 + $0x380]]  ;;  %v2101_v11 = vshrl.u32 %v144_v10, 7  ;;  %s1969_s21 = smov 64   ;;  %vm299_vm0 = vcmask 261120   ;;  %vm190_vm1 = vcmask 523264   ;;  %vm1971_vm2 = vmmov 0  }
  0x27   :  { %196 = vmatprep.subr.bf16.mxu0 %v2046_v3  ;;  %307 = vmatprep.subr.bf16.mxu1 %v2046_v3  ;;  %s63_s11 = sld [smem:[#allocation2]]  ;;  %s1970_s22 = smov 32   ;;  %vm1093_vm3 = vcmask 1040384   ;;  %vm1095_vm4 = vcmask 1041408   ;;  %vm1097_vm5 = vcmask 1042432   ;;  %vm1099_vm6 = vcmask 1043456  }
  0x28   :  { %v2104_v12 = vsub.s32 1, %v2101_v11  ;;  %s1638_s1 = sld [smem:[#allocation2 + $0x300]]  ;;  %vm1101_vm7 = vcmask 1044480   ;;  %vm1103_vm8 = vcmask 1045504   ;;  %vm1105_vm9 = vcmask 1046528  }
  0x29   :  { %s1623_s23 = sld [smem:[#allocation2 + $0x80]]  ;;  %vm1195_vm10 = vcmask 64512  }
  0x2a   :  { %197 = vmatpush1.bf16.msra.mxu0 %v2053_v4  ;;  %308 = vmatpush1.bf16.msra.mxu1 %v2053_v4 }
  0x2b   :  { %198 = vmatprep.subr.bf16.mxu0 %v2060_v5  ;;  %309 = vmatprep.subr.bf16.mxu1 %v2060_v5 }
  0x2c   :  { %s134_s12 = sshra.s32 %s1641_s2, 3  ;;  %s137_s13 = sand.u32 7, %s1641_s2 }
  0x2d   :  { %s64_s0 = sshra.s32 %s63_s11, 3  ;;  %s1684_s14 = sshll.u32 %s134_s12, 4 }
  0x2e   :  { %199 = vmatpush1.bf16.msra.mxu0 %v2067_v6  ;;  %310 = vmatpush1.bf16.msra.mxu1 %v2067_v6  ;;  %s67_s15 = sand.u32 7, %s63_s11  ;;  %s1677_s16 = sshll.u32 %s64_s0, 4 }
  0x2f   :  { %200 = vmatprep.subr.bf16.mxu0 %v2074_v7  ;;  %311 = vmatprep.subr.bf16.mxu1 %v2074_v7  ;;  %s140_s17 = sadd.s32 %s1684_s14, %s137_s13  ;;  %s70_s18 = sadd.s32 %s1677_s16, %s67_s15 }
  0x30   :  { %s141_s19 = scalar_lea.vmem [#allocation6], %s140_s17  ;;  %s71_s20 = scalar_lea.vmem [#allocation6], %s70_s18 }
  0x31   :  { %v2106_v13 = vld [vmem:[%s141_s19] ss:$8 sm:$0x3]  ;;  %s124_s24 = sshra.s32 %s1638_s1, 3  ;;  %s74_s25 = sshra.s32 %s1623_s23, 3 }
  0x32   :  { %201 = vmatpush1.bf16.msra.mxu0 %v2081_v8  ;;  %312 = vmatpush1.bf16.msra.mxu1 %v2081_v8  ;;  %v2108_v14 = vld [vmem:[%s71_s20] ss:$8 sm:$0x3]  ;;  %v147_v15 = vrot.slane %v2106_v13, %v2104_v12  ;;  %s127_s26 = sand.u32 7, %s1638_s1  ;;  %s1683_s27 = sshll.u32 %s124_s24, 4 }
  0x33   :  { %415 = vmatprep.subr.bf16.mxu0 %v2033_v0  ;;  %525 = vmatprep.subr.bf16.mxu1 %v2033_v0  ;;  %s77_s28 = sand.u32 7, %s1623_s23  ;;  %s1678_s29 = sshll.u32 %s74_s25, 4 }
  0x34   :  { %s130_s30 = sadd.s32 %s1683_s27, %s127_s26  ;;  %s80_s8 = sadd.s32 %s1678_s29, %s77_s28 }
  0x35   :  { %227 = vmatmul.mubr.bf16.vlgmr.msra.gmra.mrb[0].mxu0 %v1968_v9  ;;  %s131_s9 = scalar_lea.vmem [#allocation6], %s130_s30  ;;  %s81_s10 = scalar_lea.vmem [#allocation6], %s80_s8 }
  0x36   :  { %416 = vmatpush1.bf16.msra.mxu0 %v2038_v1  ;;  %447 = vmatprep.mubr.bf16.mxu0 %v1967_v2  ;;  %v2144_v52 = vld [vmem:[%s131_s9] ss:$8 sm:$0x3]  ;;  %s1635_s2 = sld [smem:[#allocation2 + $0x280]] }
  0x37   :  { %417 = vmatprep.subr.bf16.mxu0 %v2046_v3  ;;  %v2146_v53 = vld [vmem:[%s81_s10] ss:$8 sm:$0x3]  ;;  %v289_v54 = vrot.slane %v2144_v52, %v2104_v12  ;;  %s1626_s11 = sld [smem:[#allocation2 + $0x100]] }
  0x38   :  { %s1632_s1 = sld [smem:[#allocation2 + $0x200]] }
  0x39   :  { %s1629_s23 = sld [smem:[#allocation2 + $0x180]] }
  0x3a   :  { %418 = vmatpush1.bf16.msra.mxu0 %v2053_v4 }
  0x3b   :  { %419 = vmatprep.subr.bf16.mxu0 %v2060_v5 }
  0x3c   :  { %s114_s12 = sshra.s32 %s1635_s2, 3  ;;  %s117_s13 = sand.u32 7, %s1635_s2 }
  0x3d   :  { %s84_s0 = sshra.s32 %s1626_s11, 3  ;;  %s1682_s14 = sshll.u32 %s114_s12, 4 }
  0x3e   :  { %420 = vmatpush1.bf16.msra.mxu0 %v2067_v6  ;;  %s87_s15 = sand.u32 7, %s1626_s11  ;;  %s1679_s16 = sshll.u32 %s84_s0, 4 }
  0x3f   :  { %421 = vmatprep.subr.bf16.mxu0 %v2074_v7  ;;  %s120_s17 = sadd.s32 %s1682_s14, %s117_s13  ;;  %s90_s18 = sadd.s32 %s1679_s16, %s87_s15 }
  0x40   :  { %s121_s19 = scalar_lea.vmem [#allocation6], %s120_s17  ;;  %s91_s20 = scalar_lea.vmem [#allocation6], %s90_s18 }
  0x41   :  { %s104_s24 = sshra.s32 %s1632_s1, 3  ;;  %s94_s25 = sshra.s32 %s1629_s23, 3 }
  0x42   :  { %422 = vmatpush1.bf16.msra.mxu0 %v2081_v8  ;;  %s107_s26 = sand.u32 7, %s1632_s1  ;;  %s1681_s27 = sshll.u32 %s104_s24, 4 }
  0x43   :  { %635 = vmatprep.subr.bf16.mxu0 %v2033_v0  ;;  %s97_s28 = sand.u32 7, %s1629_s23  ;;  %s1680_s29 = sshll.u32 %s94_s25, 4 }
  0x44   :  { %s110_s30 = sadd.s32 %s1681_s27, %s107_s26  ;;  %s100_s8 = sadd.s32 %s1680_s29, %s97_s28 }
  0x45   :  { %s111_s9 = scalar_lea.vmem [#allocation6], %s110_s30  ;;  %s101_s10 = scalar_lea.vmem [#allocation6], %s100_s8 }
 0x108   :  { %v228_v16 = vpop.f32.mrb[0].mxu0 }
 0x109   :  { %v235_v17 = vadd.f32 %v228_v16, %v2108_v14  ;;  %v230_v18 = vpop.f32.mrb[1].mxu0 }
 0x10a   :  { %v232_v19 = vpop.f32.mrb[2].mxu0  ;;  %v236_v20 = vadd.f32 %v230_v18, %v147_v15 }
 0x10b   :  { %1749 = vtanh.f32 %v235_v17  ;;  %v233_v21 = vpop.f32.mrb[3].mxu0  ;;  %v1652_v24 = vmul.f32 -1.442695, %v235_v17 }
 0x10c   :  { %1751 = vtanh.f32 %v236_v20  ;;  %v1653_v25 = vmul.f32 -1.442695, %v236_v20 }
 0x10d   :  { %1753 = vpow2.f32 %v1652_v24 }
 0x10e   :  { %1755 = vpow2.f32 %v1653_v25 }
 0x115   :  { %v1750_v22 = vpop.eup %1749 }
 0x116   :  { %253 = vrot.lane.b32.xlu0 %v1750_v22, %s1969_s21  ;;  %v1752_v23 = vpop.eup %1751 }
 0x117   :  { %v1754_v26 = vpop.eup %1753 }
 0x118   :  { %v243_v27 = vadd.f32 1.0, %v1754_v26  ;;  %v1756_v28 = vpop.eup %1755 }
 0x119   :  { %v244_v29 = vadd.f32 1.0, %v1756_v28 }
 0x11a   :  { %270 = vrot.lane.b32.xlu0 %v1752_v23, %s1969_s21  ;;  %1757 = vrcp.f32 %v243_v27 }
 0x11b   :  { %1759 = vrcp.f32 %v244_v29 }
 0x124   :  { %v1758_v30 = vpop.eup %1757 }
 0x125   :  { %v1760_v33 = vpop.eup %1759  ;;  %v251_v36 = vmul.f32 0.0, %v1758_v30 }
 0x126   :  { %v268_v39 = vmul.f32 0.0, %v1760_v33 }
 0x188   :  { %v254_v31 = vpop.permute.xlu0 %253 }
 0x189   :  { %v256_v32 = vmul.f32 %v1758_v30, %v254_v31 }
 0x18b   :  { %258 = vrot.lane.b32.xlu1 %v256_v32, %s1970_s22 }
 0x18c   :  { %v271_v34 = vpop.permute.xlu0 %270 }
 0x18d   :  { %v273_v35 = vmul.f32 %v1760_v33, %v271_v34 }
 0x18f   :  { %275 = vrot.lane.b32.xlu1 %v273_v35, %s1970_s22 }
 0x1fd   :  { %v259_v37 = vpop.permute.xlu1 %258 }
 0x1fe   :  { %v2117_v38 = vadd.f32 %v259_v37, %v251_v36 }
 0x200   :  { %1761 = vtanh.f32 %v2117_v38 }
 0x201   :  { %v276_v40 = vpop.permute.xlu1 %275 }
 0x202   :  { %v2120_v41 = vadd.f32 %v276_v40, %v268_v39 }
 0x204   :  { %1763 = vtanh.f32 %v2120_v41 }
 0x20a   :  { %v1762_v42 = vpop.eup %1761 }
 0x20b   :  { %264 = vrot.lane.b32.xlu0 %v1762_v42, %s1969_s21  ;;  %v2184_v42 = vld [vmem:[%s121_s19] ss:$8 sm:$0x3] }
 0x20e   :  { %v1764_v43 = vpop.eup %1763 }
 0x20f   :  { %281 = vrot.lane.b32.xlu1 %v1764_v43, %s1969_s21  ;;  %v2186_v43 = vld [vmem:[%s91_s20] ss:$8 sm:$0x3] }
 0x27d   :  { %v265_v44 = vpop.permute.xlu0 %264 }
 0x27e   :  { %v267_v45 = vmul.f32 %v1758_v30, %v265_v44  ;;  %v400_v44 = vrot.slane %v2184_v42, %v2104_v12 }
 0x280   :  { %292 = vrot.lane.b32.xlu0 %v267_v45, %s1970_s22 }
 0x281   :  { %v282_v46 = vpop.permute.xlu1 %281 }
 0x282   :  { %v284_v47 = vmul.f32 %v1760_v33, %v282_v46 }
 0x284   :  { %296 = vrot.lane.b32.xlu1 %v284_v47, %s1969_s21 }
 0x2f2   :  { %v2127_v48 = vpop.permute.xlu0 %292 }
 0x2f6   :  { %v2129_v49 = vpop.permute.xlu1 %296 }
 0x2f7   :  { %v300_v50 = vsel %vm299_vm0, %v2127_v48, %v2129_v49 }
 0x2f8   :  { %v301_v51 = vpack.c.bf16 %v300_v50, %v300_v50 }
 0x2fa   :  { %1654 = vmatmul.mubr.msk.bf16.vlgmr.msra.gmra.mrb[0].mxu1 %vm190_vm1, %v301_v51 }
 0x2fb   :  { %526 = vmatpush1.bf16.msra.mxu1 %v2038_v1  ;;  %557 = vmatprep.mubr.bf16.mxu1 %v1967_v2 }
 0x2fc   :  { %527 = vmatprep.subr.bf16.mxu1 %v2046_v3 }
 0x2ff   :  { %528 = vmatpush1.bf16.msra.mxu1 %v2053_v4 }
 0x300   :  { %529 = vmatprep.subr.bf16.mxu1 %v2060_v5 }
 0x303   :  { %530 = vmatpush1.bf16.msra.mxu1 %v2067_v6 }
 0x304   :  { %531 = vmatprep.subr.bf16.mxu1 %v2074_v7 }
 0x307   :  { %532 = vmatpush1.bf16.msra.mxu1 %v2081_v8 }
 0x308   :  { %745 = vmatprep.subr.bf16.mxu1 %v2033_v0 }
 0x3cd   :  { %v339_v55 = vpop.f32.mrb[0].mxu1 }
 0x3ce   :  { %v346_v56 = vadd.f32 %v339_v55, %v2146_v53  ;;  %v341_v57 = vpop.f32.mrb[1].mxu1 }
 0x3cf   :  { %v347_v58 = vadd.f32 %v341_v57, %v289_v54  ;;  %v343_v59 = vpop.f32.mrb[2].mxu1 }
 0x3d0   :  { %1765 = vtanh.f32 %v346_v56  ;;  %v344_v60 = vpop.f32.mrb[3].mxu1  ;;  %v1655_v63 = vmul.f32 -1.442695, %v346_v56 }
 0x3d1   :  { %1767 = vtanh.f32 %v347_v58  ;;  %v1656_v15 = vmul.f32 -1.442695, %v347_v58 }
 0x3d2   :  { %1769 = vpow2.f32 %v1655_v63 }
 0x3d3   :  { %1771 = vpow2.f32 %v1656_v15 }
 0x3da   :  { %v1766_v61 = vpop.eup %1765 }
 0x3db   :  { %v1768_v62 = vpop.eup %1767  ;;  %364 = vrot.lane.b32.xlu0 %v1766_v61, %s1969_s21 }
 0x3dc   :  { %381 = vrot.lane.b32.xlu1 %v1768_v62, %s1969_s21  ;;  %v1770_v16 = vpop.eup %1769 }
 0x3dd   :  { %v1772_v17 = vpop.eup %1771  ;;  %v354_v18 = vadd.f32 1.0, %v1770_v16 }
 0x3de   :  { %v355_v19 = vadd.f32 1.0, %v1772_v17 }
 0x3df   :  { %1773 = vrcp.f32 %v354_v18 }
 0x3e0   :  { %1775 = vrcp.f32 %v355_v19 }
 0x3e9   :  { %v1774_v20 = vpop.eup %1773 }
 0x3ea   :  { %v1776_v22 = vpop.eup %1775  ;;  %v362_v26 = vmul.f32 %v1774_v20, %v2117_v38 }
 0x3eb   :  { %v379_v28 = vmul.f32 %v1776_v22, %v2120_v41 }
 0x44d   :  { %v365_v21 = vpop.permute.xlu0 %364 }
 0x44e   :  { %v367_v23 = vmul.f32 %v1774_v20, %v365_v21  ;;  %v382_v24 = vpop.permute.xlu1 %381 }
 0x44f   :  { %v384_v25 = vmul.f32 %v1776_v22, %v382_v24 }
 0x450   :  { %369 = vrot.lane.b32.xlu0 %v367_v23, %s1970_s22 }
 0x451   :  { %386 = vrot.lane.b32.xlu1 %v384_v25, %s1970_s22 }
 0x4c2   :  { %v370_v27 = vpop.permute.xlu0 %369 }
 0x4c3   :  { %v2157_v29 = vadd.f32 %v370_v27, %v362_v26  ;;  %v387_v30 = vpop.permute.xlu1 %386 }
 0x4c4   :  { %v2159_v31 = vadd.f32 %v387_v30, %v379_v28 }
 0x4c5   :  { %1777 = vtanh.f32 %v2157_v29 }
 0x4c6   :  { %1779 = vtanh.f32 %v2159_v31 }
 0x4cf   :  { %v1778_v32 = vpop.eup %1777 }
 0x4d0   :  { %v1780_v33 = vpop.eup %1779  ;;  %375 = vrot.lane.b32.xlu0 %v1778_v32, %s1969_s21 }
 0x4d1   :  { %392 = vrot.lane.b32.xlu1 %v1780_v33, %s1969_s21 }
 0x542   :  { %v376_v34 = vpop.permute.xlu0 %375 }
 0x543   :  { %v378_v35 = vmul.f32 %v1774_v20, %v376_v34  ;;  %v393_v36 = vpop.permute.xlu1 %392 }
 0x544   :  { %v395_v37 = vmul.f32 %v1776_v22, %v393_v36  ;;  %v2224_v36 = vld [vmem:[%s111_s9] ss:$8 sm:$0x3] }
 0x545   :  { %403 = vrot.lane.b32.xlu0 %v378_v35, %s1970_s22 }
 0x546   :  { %407 = vrot.lane.b32.xlu1 %v395_v37, %s1969_s21  ;;  %v2226_v37 = vld [vmem:[%s101_s10] ss:$8 sm:$0x3] }
 0x5b7   :  { %v2167_v38 = vpop.permute.xlu0 %403 }
 0x5b8   :  { %v2169_v39 = vpop.permute.xlu1 %407 }
 0x5b9   :  { %v410_v40 = vsel %vm299_vm0, %v2167_v38, %v2169_v39 }
 0x5ba   :  { %v411_v41 = vpack.c.bf16 %v410_v40, %v410_v40  ;;  %v510_v40 = vrot.slane %v2224_v36, %v2104_v12 }
 0x5bc   :  { %1657 = vmatmul.mubr.msk.bf16.vlgmr.msra.gmra.mrb[4].mxu0 %vm190_vm1, %v411_v41 }
 0x5bd   :  { %636 = vmatpush1.bf16.msra.mxu0 %v2038_v1  ;;  %667 = vmatprep.mubr.bf16.mxu0 %v1967_v2 }
 0x5be   :  { %637 = vmatprep.subr.bf16.mxu0 %v2046_v3 }
 0x5c1   :  { %638 = vmatpush1.bf16.msra.mxu0 %v2053_v4 }
 0x5c2   :  { %639 = vmatprep.subr.bf16.mxu0 %v2060_v5 }
 0x5c5   :  { %640 = vmatpush1.bf16.msra.mxu0 %v2067_v6 }
 0x5c6   :  { %641 = vmatprep.subr.bf16.mxu0 %v2074_v7 }
 0x5c9   :  { %642 = vmatpush1.bf16.msra.mxu0 %v2081_v8 }
 0x5ca   :  { %855 = vmatprep.subr.bf16.mxu0 %v2033_v0 }
 0x68f   :  { %v449_v45 = vpop.f32.mrb[4].mxu0 }
 0x690   :  { %v456_v46 = vadd.f32 %v449_v45, %v2186_v43  ;;  %v451_v47 = vpop.f32.mrb[5].mxu0 }
 0x691   :  { %v457_v50 = vadd.f32 %v451_v47, %v400_v44  ;;  %v453_v51 = vpop.f32.mrb[6].mxu0 }
 0x692   :  { %1781 = vtanh.f32 %v456_v46  ;;  %v454_v54 = vpop.f32.mrb[7].mxu0  ;;  %v1658_v57 = vmul.f32 -1.442695, %v456_v46 }
 0x693   :  { %1783 = vtanh.f32 %v457_v50  ;;  %v1659_v58 = vmul.f32 -1.442695, %v457_v50 }
 0x694   :  { %1785 = vpow2.f32 %v1658_v57 }
 0x695   :  { %1787 = vpow2.f32 %v1659_v58 }
 0x69c   :  { %v1782_v55 = vpop.eup %1781 }
 0x69d   :  { %v1784_v56 = vpop.eup %1783  ;;  %474 = vrot.lane.b32.xlu0 %v1782_v55, %s1969_s21 }
 0x69e   :  { %491 = vrot.lane.b32.xlu1 %v1784_v56, %s1969_s21  ;;  %v1786_v59 = vpop.eup %1785 }
 0x69f   :  { %v1788_v60 = vpop.eup %1787  ;;  %v464_v61 = vadd.f32 1.0, %v1786_v59 }
 0x6a0   :  { %v465_v62 = vadd.f32 1.0, %v1788_v60 }
 0x6a1   :  { %1789 = vrcp.f32 %v464_v61 }
 0x6a2   :  { %1791 = vrcp.f32 %v465_v62 }
 0x6ab   :  { %v1790_v63 = vpop.eup %1789 }
 0x6ac   :  { %v1792_v16 = vpop.eup %1791  ;;  %v472_v20 = vmul.f32 %v1790_v63, %v2157_v29 }
 0x6ad   :  { %v489_v22 = vmul.f32 %v1792_v16, %v2159_v31 }
 0x70f   :  { %v475_v15 = vpop.permute.xlu0 %474 }
 0x710   :  { %v477_v17 = vmul.f32 %v1790_v63, %v475_v15  ;;  %v492_v18 = vpop.permute.xlu1 %491 }
 0x711   :  { %v494_v19 = vmul.f32 %v1792_v16, %v492_v18 }
 0x712   :  { %479 = vrot.lane.b32.xlu0 %v477_v17, %s1970_s22 }
 0x713   :  { %496 = vrot.lane.b32.xlu1 %v494_v19, %s1970_s22 }
 0x784   :  { %v480_v21 = vpop.permute.xlu0 %479 }
 0x785   :  { %v2197_v23 = vadd.f32 %v480_v21, %v472_v20  ;;  %v497_v24 = vpop.permute.xlu1 %496 }
 0x786   :  { %v2199_v25 = vadd.f32 %v497_v24, %v489_v22 }
 0x787   :  { %1793 = vtanh.f32 %v2197_v23 }
 0x788   :  { %1795 = vtanh.f32 %v2199_v25 }
 0x791   :  { %v1794_v26 = vpop.eup %1793 }
 0x792   :  { %v1796_v27 = vpop.eup %1795  ;;  %485 = vrot.lane.b32.xlu0 %v1794_v26, %s1969_s21 }
 0x793   :  { %502 = vrot.lane.b32.xlu1 %v1796_v27, %s1969_s21 }
 0x804   :  { %v486_v28 = vpop.permute.xlu0 %485 }
 0x805   :  { %v488_v29 = vmul.f32 %v1790_v63, %v486_v28  ;;  %v503_v30 = vpop.permute.xlu1 %502 }
 0x806   :  { %v505_v32 = vmul.f32 %v1792_v16, %v503_v30 }
 0x807   :  { %513 = vrot.lane.b32.xlu0 %v488_v29, %s1970_s22 }
 0x808   :  { %517 = vrot.lane.b32.xlu1 %v505_v32, %s1969_s21 }
 0x879   :  { %v2207_v31 = vpop.permute.xlu0 %513 }
 0x87a   :  { %v2209_v33 = vpop.permute.xlu1 %517 }
 0x87b   :  { %v520_v34 = vsel %vm299_vm0, %v2207_v31, %v2209_v33 }
 0x87c   :  { %v521_v35 = vpack.c.bf16 %v520_v34, %v520_v34 }
 0x87e   :  { %1660 = vmatmul.mubr.msk.bf16.vlgmr.msra.gmra.mrb[4].mxu1 %vm190_vm1, %v521_v35  ;;  %v620_v35 = vrot.slane %v2226_v37, %v2104_v12 }
 0x87f   :  { %746 = vmatpush1.bf16.msra.mxu1 %v2038_v1  ;;  %777 = vmatprep.mubr.bf16.mxu1 %v1967_v2 }
 0x880   :  { %747 = vmatprep.subr.bf16.mxu1 %v2046_v3 }
 0x883   :  { %748 = vmatpush1.bf16.msra.mxu1 %v2053_v4 }
 0x884   :  { %749 = vmatprep.subr.bf16.mxu1 %v2060_v5 }
 0x887   :  { %750 = vmatpush1.bf16.msra.mxu1 %v2067_v6 }
 0x888   :  { %751 = vmatprep.subr.bf16.mxu1 %v2074_v7 }
 0x88b   :  { %752 = vmatpush1.bf16.msra.mxu1 %v2081_v8 }
 0x88c   :  { %965 = vmatprep.subr.bf16.mxu1 %v2033_v0 }
 0x951   :  { %v559_v0 = vpop.f32.mrb[4].mxu1 }
 0x952   :  { %v566_v41 = vadd.f32 %v559_v0, %v2226_v37  ;;  %v561_v44 = vpop.f32.mrb[5].mxu1 }
 0x953   :  { %v567_v45 = vadd.f32 %v561_v44, %v510_v40  ;;  %v563_v46 = vpop.f32.mrb[6].mxu1 }
 0x954   :  { %1797 = vtanh.f32 %v566_v41  ;;  %v564_v47 = vpop.f32.mrb[7].mxu1  ;;  %v1661_v54 = vmul.f32 -1.442695, %v566_v41 }
 0x955   :  { %1799 = vtanh.f32 %v567_v45  ;;  %v1662_v55 = vmul.f32 -1.442695, %v567_v45 }
 0x956   :  { %1801 = vpow2.f32 %v1661_v54 }
 0x957   :  { %1803 = vpow2.f32 %v1662_v55 }
 0x95e   :  { %v1798_v50 = vpop.eup %1797 }
 0x95f   :  { %v1800_v51 = vpop.eup %1799  ;;  %584 = vrot.lane.b32.xlu0 %v1798_v50, %s1969_s21 }
 0x960   :  { %601 = vrot.lane.b32.xlu1 %v1800_v51, %s1969_s21  ;;  %v1802_v56 = vpop.eup %1801 }
 0x961   :  { %v1804_v57 = vpop.eup %1803  ;;  %v574_v58 = vadd.f32 1.0, %v1802_v56 }
 0x962   :  { %v575_v59 = vadd.f32 1.0, %v1804_v57 }
 0x963   :  { %1805 = vrcp.f32 %v574_v58 }
 0x964   :  { %1807 = vrcp.f32 %v575_v59 }
 0x96d   :  { %v1806_v60 = vpop.eup %1805 }
 0x96e   :  { %v1808_v62 = vpop.eup %1807  ;;  %v582_v17 = vmul.f32 %v1806_v60, %v2197_v23 }
 0x96f   :  { %v599_v19 = vmul.f32 %v1808_v62, %v2199_v25 }
 0x9d1   :  { %v585_v61 = vpop.permute.xlu0 %584 }
 0x9d2   :  { %v587_v63 = vmul.f32 %v1806_v60, %v585_v61  ;;  %v602_v15 = vpop.permute.xlu1 %601 }
 0x9d3   :  { %v604_v16 = vmul.f32 %v1808_v62, %v602_v15 }
 0x9d4   :  { %589 = vrot.lane.b32.xlu0 %v587_v63, %s1970_s22 }
 0x9d5   :  { %606 = vrot.lane.b32.xlu1 %v604_v16, %s1970_s22 }
 0xa46   :  { %v590_v18 = vpop.permute.xlu0 %589 }
 0xa47   :  { %v592_v20 = vadd.f32 %v590_v18, %v582_v17  ;;  %v607_v21 = vpop.permute.xlu1 %606 }
 0xa48   :  { %v609_v22 = vadd.f32 %v607_v21, %v599_v19 }
 0xa49   :  { %1809 = vtanh.f32 %v592_v20 }
 0xa4a   :  { %1811 = vtanh.f32 %v609_v22 }
 0xa53   :  { %v1810_v24 = vpop.eup %1809 }
 0xa54   :  { %v1812_v26 = vpop.eup %1811  ;;  %595 = vrot.lane.b32.xlu0 %v1810_v24, %s1969_s21 }
 0xa55   :  { %612 = vrot.lane.b32.xlu1 %v1812_v26, %s1969_s21 }
 0xac6   :  { %v596_v27 = vpop.permute.xlu0 %595 }
 0xac7   :  { %v598_v28 = vmul.f32 %v1806_v60, %v596_v27  ;;  %v613_v29 = vpop.permute.xlu1 %612 }
 0xac8   :  { %v615_v30 = vmul.f32 %v1808_v62, %v613_v29 }
 0xac9   :  { %623 = vrot.lane.b32.xlu0 %v598_v28, %s1970_s22 }
 0xaca   :  { %627 = vrot.lane.b32.xlu1 %v615_v30, %s1969_s21 }
 0xb3b   :  { %v2241_v23 = vpop.permute.xlu0 %623 }
 0xb3c   :  { %v2243_v25 = vpop.permute.xlu1 %627 }
 0xb3d   :  { %v630_v32 = vsel %vm299_vm0, %v2241_v23, %v2243_v25 }
 0xb3e   :  { %v631_v34 = vpack.c.bf16 %v630_v32, %v630_v32 }
 0xb40   :  { %1663 = vmatmul.mubr.msk.bf16.vlgmr.msra.gmra.mrb[8].mxu0 %vm190_vm1, %v631_v34  ;;  %v730_v34 = vrot.slane %v2186_v43, %v2104_v12 }
 0xb41   :  { %856 = vmatpush1.bf16.msra.mxu0 %v2038_v1  ;;  %887 = vmatprep.mubr.bf16.mxu0 %v1967_v2 }
 0xb42   :  { %857 = vmatprep.subr.bf16.mxu0 %v2046_v3 }
 0xb45   :  { %858 = vmatpush1.bf16.msra.mxu0 %v2053_v4 }
 0xb46   :  { %859 = vmatprep.subr.bf16.mxu0 %v2060_v5 }
 0xb49   :  { %860 = vmatpush1.bf16.msra.mxu0 %v2067_v6 }
 0xb4a   :  { %861 = vmatprep.subr.bf16.mxu0 %v2074_v7 }
 0xb4d   :  { %862 = vmatpush1.bf16.msra.mxu0 %v2081_v8 }
 0xb4e   :  { %1713 = vmatprep.subr.bf16.mxu0 %v1968_v9 }
 0xc13   :  { %v669_v40 = vpop.f32.mrb[8].mxu0 }
 0xc14   :  { %v676_v0 = vadd.f32 %v669_v40, %v2224_v36  ;;  %v671_v41 = vpop.f32.mrb[9].mxu0 }
 0xc15   :  { %v677_v44 = vadd.f32 %v671_v41, %v620_v35  ;;  %v673_v45 = vpop.f32.mrb[10].mxu0 }
 0xc16   :  { %1813 = vtanh.f32 %v676_v0  ;;  %v674_v46 = vpop.f32.mrb[11].mxu0  ;;  %v1664_v51 = vmul.f32 -1.442695, %v676_v0 }
 0xc17   :  { %1815 = vtanh.f32 %v677_v44  ;;  %v1665_v54 = vmul.f32 -1.442695, %v677_v44 }
 0xc18   :  { %1817 = vpow2.f32 %v1664_v51 }
 0xc19   :  { %1819 = vpow2.f32 %v1665_v54 }
 0xc20   :  { %v1814_v47 = vpop.eup %1813 }
 0xc21   :  { %v1816_v50 = vpop.eup %1815  ;;  %694 = vrot.lane.b32.xlu0 %v1814_v47, %s1969_s21 }
 0xc22   :  { %711 = vrot.lane.b32.xlu1 %v1816_v50, %s1969_s21  ;;  %v1818_v37 = vpop.eup %1817 }
 0xc23   :  { %v1820_v55 = vpop.eup %1819  ;;  %v684_v56 = vadd.f32 1.0, %v1818_v37 }
 0xc24   :  { %v685_v36 = vadd.f32 1.0, %v1820_v55 }
 0xc25   :  { %1821 = vrcp.f32 %v684_v56 }
 0xc26   :  { %1823 = vrcp.f32 %v685_v36 }
 0xc2f   :  { %v1822_v57 = vpop.eup %1821 }
 0xc30   :  { %v1824_v59 = vpop.eup %1823  ;;  %v692_v63 = vmul.f32 %v1822_v57, %v592_v20 }
 0xc31   :  { %v709_v16 = vmul.f32 %v1824_v59, %v609_v22 }
 0xc93   :  { %v695_v58 = vpop.permute.xlu0 %694 }
 0xc94   :  { %v697_v60 = vmul.f32 %v1822_v57, %v695_v58  ;;  %v712_v61 = vpop.permute.xlu1 %711 }
 0xc95   :  { %v714_v62 = vmul.f32 %v1824_v59, %v712_v61 }
 0xc96   :  { %699 = vrot.lane.b32.xlu0 %v697_v60, %s1970_s22 }
 0xc97   :  { %716 = vrot.lane.b32.xlu1 %v714_v62, %s1970_s22 }
 0xd08   :  { %v700_v15 = vpop.permute.xlu0 %699 }
 0xd09   :  { %v702_v17 = vadd.f32 %v700_v15, %v692_v63  ;;  %v717_v18 = vpop.permute.xlu1 %716 }
 0xd0a   :  { %v719_v19 = vadd.f32 %v717_v18, %v709_v16 }
 0xd0b   :  { %1825 = vtanh.f32 %v702_v17 }
 0xd0c   :  { %1827 = vtanh.f32 %v719_v19 }
 0xd15   :  { %v1826_v21 = vpop.eup %1825 }
 0xd16   :  { %v1828_v24 = vpop.eup %1827  ;;  %705 = vrot.lane.b32.xlu0 %v1826_v21, %s1969_s21 }
 0xd17   :  { %722 = vrot.lane.b32.xlu1 %v1828_v24, %s1969_s21 }
 0xd88   :  { %v706_v26 = vpop.permute.xlu0 %705 }
 0xd89   :  { %v708_v27 = vmul.f32 %v1822_v57, %v706_v26  ;;  %v723_v28 = vpop.permute.xlu1 %722 }
 0xd8a   :  { %v725_v29 = vmul.f32 %v1824_v59, %v723_v28 }
 0xd8b   :  { %733 = vrot.lane.b32.xlu0 %v708_v27, %s1970_s22 }
 0xd8c   :  { %737 = vrot.lane.b32.xlu1 %v725_v29, %s1969_s21 }
 0xdfd   :  { %v2269_v20 = vpop.permute.xlu0 %733 }
 0xdfe   :  { %v2271_v22 = vpop.permute.xlu1 %737 }
 0xdff   :  { %v740_v30 = vsel %vm299_vm0, %v2269_v20, %v2271_v22 }
 0xe00   :  { %v741_v32 = vpack.c.bf16 %v740_v30, %v740_v30 }
 0xe02   :  { %1666 = vmatmul.mubr.msk.bf16.vlgmr.msra.gmra.mrb[8].mxu1 %vm190_vm1, %v741_v32 }
 0xe03   :  { %966 = vmatpush1.bf16.msra.mxu1 %v2038_v1  ;;  %997 = vmatprep.mubr.bf16.mxu1 %v1967_v2 }
 0xe04   :  { %967 = vmatprep.subr.bf16.mxu1 %v2046_v3 }
 0xe07   :  { %968 = vmatpush1.bf16.msra.mxu1 %v2053_v4 }
 0xe08   :  { %969 = vmatprep.subr.bf16.mxu1 %v2060_v5 }
 0xe0b   :  { %970 = vmatpush1.bf16.msra.mxu1 %v2067_v6 }
 0xe0c   :  { %971 = vmatprep.subr.bf16.mxu1 %v2074_v7 }
 0xe0f   :  { %972 = vmatpush1.bf16.msra.mxu1 %v2081_v8 }
 0xed5   :  { %v779_v35 = vpop.f32.mrb[8].mxu1 }
 0xed6   :  { %v786_v1 = vadd.f32 %v779_v35, %v2184_v42  ;;  %v781_v40 = vpop.f32.mrb[9].mxu1 }
 0xed7   :  { %v787_v2 = vadd.f32 %v781_v40, %v730_v34  ;;  %v783_v0 = vpop.f32.mrb[10].mxu1 }
 0xed8   :  { %1829 = vtanh.f32 %v786_v1  ;;  %v784_v3 = vpop.f32.mrb[11].mxu1  ;;  %v1667_v6 = vmul.f32 -1.442695, %v786_v1 }
 0xed9   :  { %1831 = vtanh.f32 %v787_v2  ;;  %v1668_v7 = vmul.f32 -1.442695, %v787_v2 }
 0xeda   :  { %1833 = vpow2.f32 %v1667_v6 }
 0xedb   :  { %1835 = vpow2.f32 %v1668_v7 }
 0xee2   :  { %v1830_v4 = vpop.eup %1829 }
 0xee3   :  { %v1832_v5 = vpop.eup %1831  ;;  %804 = vrot.lane.b32.xlu0 %v1830_v4, %s1969_s21 }
 0xee4   :  { %821 = vrot.lane.b32.xlu1 %v1832_v5, %s1969_s21  ;;  %v1834_v8 = vpop.eup %1833 }
 0xee5   :  { %v1836_v43 = vpop.eup %1835  ;;  %v794_v41 = vadd.f32 1.0, %v1834_v8 }
 0xee6   :  { %v795_v42 = vadd.f32 1.0, %v1836_v43 }
 0xee7   :  { %1837 = vrcp.f32 %v794_v41 }
 0xee8   :  { %1839 = vrcp.f32 %v795_v42 }
 0xef1   :  { %v1838_v44 = vpop.eup %1837 }
 0xef2   :  { %v1840_v46 = vpop.eup %1839  ;;  %v802_v54 = vmul.f32 %v1838_v44, %v702_v17 }
 0xef3   :  { %v819_v55 = vmul.f32 %v1840_v46, %v719_v19  ;;  %v840_v19 = vrot.slane %v2146_v53, %v2104_v12 }
 0xf55   :  { %v805_v45 = vpop.permute.xlu0 %804 }
 0xf56   :  { %v807_v47 = vmul.f32 %v1838_v44, %v805_v45  ;;  %v822_v50 = vpop.permute.xlu1 %821 }
 0xf57   :  { %v824_v51 = vmul.f32 %v1840_v46, %v822_v50 }
 0xf58   :  { %809 = vrot.lane.b32.xlu0 %v807_v47, %s1970_s22 }
 0xf59   :  { %826 = vrot.lane.b32.xlu1 %v824_v51, %s1970_s22 }
 0xfca   :  { %v810_v37 = vpop.permute.xlu0 %809 }
 0xfcb   :  { %v812_v56 = vadd.f32 %v810_v37, %v802_v54  ;;  %v827_v36 = vpop.permute.xlu1 %826 }
 0xfcc   :  { %v829_v57 = vadd.f32 %v827_v36, %v819_v55 }
 0xfcd   :  { %1841 = vtanh.f32 %v812_v56 }
 0xfce   :  { %1843 = vtanh.f32 %v829_v57 }
 0xfd7   :  { %v1842_v58 = vpop.eup %1841 }
 0xfd8   :  { %v1844_v59 = vpop.eup %1843  ;;  %815 = vrot.lane.b32.xlu0 %v1842_v58, %s1969_s21 }
 0xfd9   :  { %832 = vrot.lane.b32.xlu1 %v1844_v59, %s1969_s21 }
0x104a   :  { %v816_v60 = vpop.permute.xlu0 %815 }
0x104b   :  { %v818_v61 = vmul.f32 %v1838_v44, %v816_v60  ;;  %v833_v62 = vpop.permute.xlu1 %832 }
0x104c   :  { %v835_v63 = vmul.f32 %v1840_v46, %v833_v62 }
0x104d   :  { %843 = vrot.lane.b32.xlu0 %v818_v61, %s1970_s22 }
0x104e   :  { %847 = vrot.lane.b32.xlu1 %v835_v63, %s1969_s21 }
0x10bf   :  { %v2296_v15 = vpop.permute.xlu0 %843 }
0x10c0   :  { %v2298_v16 = vpop.permute.xlu1 %847 }
0x10c1   :  { %v850_v17 = vsel %vm299_vm0, %v2296_v15, %v2298_v16 }
0x10c2   :  { %v851_v18 = vpack.c.bf16 %v850_v17, %v850_v17 }
0x10c4   :  { %1669 = vmatmul.mubr.msk.bf16.vlgmr.msra.gmra.mrb[12].mxu0 %vm190_vm1, %v851_v18 }
0x1197   :  { %v889_v21 = vpop.f32.mrb[12].mxu0 }
0x1198   :  { %v896_v24 = vadd.f32 %v889_v21, %v2144_v52  ;;  %v891_v26 = vpop.f32.mrb[13].mxu0 }
0x1199   :  { %v897_v27 = vadd.f32 %v891_v26, %v840_v19  ;;  %v893_v28 = vpop.f32.mrb[14].mxu0 }
0x119a   :  { %1845 = vtanh.f32 %v896_v24  ;;  %v894_v29 = vpop.f32.mrb[15].mxu0  ;;  %v1670_v34 = vmul.f32 -1.442695, %v896_v24 }
0x119b   :  { %1847 = vtanh.f32 %v897_v27  ;;  %v1671_v35 = vmul.f32 -1.442695, %v897_v27 }
0x119c   :  { %1849 = vpow2.f32 %v1670_v34 }
0x119d   :  { %1851 = vpow2.f32 %v1671_v35 }
0x11a4   :  { %v1846_v30 = vpop.eup %1845 }
0x11a5   :  { %v1848_v32 = vpop.eup %1847  ;;  %914 = vrot.lane.b32.xlu0 %v1846_v30, %s1969_s21 }
0x11a6   :  { %931 = vrot.lane.b32.xlu1 %v1848_v32, %s1969_s21  ;;  %v1850_v53 = vpop.eup %1849 }
0x11a7   :  { %v1852_v1 = vpop.eup %1851  ;;  %v904_v40 = vadd.f32 1.0, %v1850_v53 }
0x11a8   :  { %v905_v52 = vadd.f32 1.0, %v1852_v1 }
0x11a9   :  { %1853 = vrcp.f32 %v904_v40 }
0x11aa   :  { %1855 = vrcp.f32 %v905_v52 }
0x11b3   :  { %v1854_v2 = vpop.eup %1853 }
0x11b4   :  { %v1856_v3 = vpop.eup %1855  ;;  %v912_v7 = vmul.f32 %v1854_v2, %v812_v56 }
0x11b5   :  { %v929_v43 = vmul.f32 %v1856_v3, %v829_v57  ;;  %v950_v57 = vrot.slane %v2108_v14, %v2104_v12 }
0x1217   :  { %v915_v0 = vpop.permute.xlu0 %914 }
0x1218   :  { %v917_v4 = vmul.f32 %v1854_v2, %v915_v0  ;;  %v932_v5 = vpop.permute.xlu1 %931  ;;  %v1107_v0 = vld [vmem:[%s2583_s3] sm:$0xff] }
0x1219   :  { %v934_v6 = vmul.f32 %v1856_v3, %v932_v5 }
0x121a   :  { %919 = vrot.lane.b32.xlu0 %v917_v4, %s1970_s22  ;;  %v1109_v4 = vld [vmem:[%s2583_s3 + $0x10] sm:$0xff] }
0x121b   :  { %936 = vrot.lane.b32.xlu1 %v934_v6, %s1970_s22  ;;  %v1110_v6 = vld [vmem:[%s2583_s3 + $0x18] sm:$0xff] }
0x128c   :  { %v920_v8 = vpop.permute.xlu0 %919 }
0x128d   :  { %v922_v41 = vadd.f32 %v920_v8, %v912_v7  ;;  %v937_v42 = vpop.permute.xlu1 %936  ;;  %v1717_v7 = vpack.c.bf16 %v1110_v6, %v1109_v4  ;;  %v1242_v6 = vsub.s32 2, %v2101_v11 }
0x128e   :  { %v939_v44 = vadd.f32 %v937_v42, %v929_v43  ;;  %v1112_v42 = vld [vmem:[%s2583_s3 + $0x28] sm:$0xff] }
0x128f   :  { %1857 = vtanh.f32 %v922_v41 }
0x1290   :  { %1859 = vtanh.f32 %v939_v44 }
0x1299   :  { %v1858_v45 = vpop.eup %1857 }
0x129a   :  { %v1860_v46 = vpop.eup %1859  ;;  %925 = vrot.lane.b32.xlu0 %v1858_v45, %s1969_s21  ;;  %v1113_v45 = vld [vmem:[%s2583_s3 + $0x30] sm:$0xff] }
0x129b   :  { %942 = vrot.lane.b32.xlu1 %v1860_v46, %s1969_s21  ;;  %v1114_v46 = vld [vmem:[%s2583_s3 + $0x38] sm:$0xff] }
0x130c   :  { %v926_v47 = vpop.permute.xlu0 %925 }
0x130d   :  { %v928_v50 = vmul.f32 %v1854_v2, %v926_v47  ;;  %v943_v51 = vpop.permute.xlu1 %942  ;;  %v1723_v47 = vpack.c.bf16 %v1114_v46, %v1113_v45 }
0x130e   :  { %v945_v54 = vmul.f32 %v1856_v3, %v943_v51  ;;  %v1108_v3 = vld [vmem:[%s2583_s3 + $0x8] sm:$0xff] }
0x130f   :  { %953 = vrot.lane.b32.xlu0 %v928_v50, %s1970_s22  ;;  %v1714_v5 = vpack.c.bf16 %v1108_v3, %v1107_v0  ;;  %v1972_v50 = vmov 0.0  }
0x1310   :  { %957 = vrot.lane.b32.xlu1 %v945_v54, %s1969_s21  ;;  %1710 = vmatprep.mubr.msk.f32.mxu0 %vm1971_vm2, %v1972_v50 }
0x1311   :  { %1715 = vmatpush3.bf16.msra.mxu0 %v1714_v5 }
0x1312   :  { %1716 = vmatprep.subr.bf16.mxu0 %v1968_v9 }
0x1315   :  { %1718 = vmatpush3.bf16.msra.mxu0 %v1717_v7 }
0x1316   :  { %1719 = vmatprep.subr.bf16.mxu0 %v1968_v9 }
0x1381   :  { %v2315_v37 = vpop.permute.xlu0 %953 }
0x1382   :  { %v2317_v55 = vpop.permute.xlu1 %957 }
0x1383   :  { %v960_v56 = vsel %vm299_vm0, %v2315_v37, %v2317_v55 }
0x1384   :  { %v961_v36 = vpack.c.bf16 %v960_v56, %v960_v56 }
0x1386   :  { %1672 = vmatmul.mubr.msk.bf16.vlgmr.msra.gmra.mrb[12].mxu1 %vm190_vm1, %v961_v36 }
0x1459   :  { %v999_v58 = vpop.f32.mrb[12].mxu1 }
0x145a   :  { %v1006_v59 = vadd.f32 %v999_v58, %v2106_v13  ;;  %v1001_v60 = vpop.f32.mrb[13].mxu1  ;;  %v1063_v58 = vsel %vm299_vm0, %v2241_v23, %v2271_v22  ;;  %v1066_v23 = vsel %vm299_vm0, %v2315_v37, %v2169_v39  ;;  %v1675_v39 = vld [vmem:[%s2584_s4] ss:$0 sm:$0xff]  ;;  %v1205_v37 = vsub.s32 0, %v2101_v11 }
0x145b   :  { %v1007_v61 = vadd.f32 %v1001_v60, %v950_v57  ;;  %v1003_v62 = vpop.f32.mrb[14].mxu1  ;;  %v1062_v57 = vsel %vm299_vm0, %v2207_v31, %v2298_v16  ;;  %v1079_v16 = vrot.slane %v1063_v58, 5 }
0x145c   :  { %1861 = vtanh.f32 %v1006_v59  ;;  %v1004_v63 = vpop.f32.mrb[15].mxu1  ;;  %v1673_v19 = vmul.f32 -1.442695, %v1006_v59  ;;  %v1064_v59 = vsel %vm299_vm0, %v2269_v20, %v2243_v25 }
0x145d   :  { %1863 = vtanh.f32 %v1007_v61  ;;  %v1674_v21 = vmul.f32 -1.442695, %v1007_v61  ;;  %v1082_v20 = vrot.slane %v1064_v59, 4 }
0x145e   :  { %1865 = vpow2.f32 %v1673_v19 }
0x145f   :  { %1867 = vpow2.f32 %v1674_v21 }
0x1466   :  { %v1862_v17 = vpop.eup %1861 }
0x1467   :  { %v1864_v18 = vpop.eup %1863  ;;  %1024 = vrot.lane.b32.xlu1 %v1862_v17, %s1969_s21 }
0x1468   :  { %1041 = vrot.lane.b32.xlu0 %v1864_v18, %s1969_s21  ;;  %v1866_v14 = vpop.eup %1865 }
0x1469   :  { %v1868_v24 = vpop.eup %1867  ;;  %v1014_v26 = vadd.f32 1.0, %v1866_v14 }
0x146a   :  { %v1015_v13 = vadd.f32 1.0, %v1868_v24 }
0x146b   :  { %1869 = vrcp.f32 %v1014_v26 }
0x146c   :  { %1871 = vrcp.f32 %v1015_v13 }
0x1475   :  { %v1870_v27 = vpop.eup %1869 }
0x1476   :  { %v1872_v29 = vpop.eup %1871  ;;  %v1022_v35 = vmul.f32 %v1870_v27, %v922_v41  ;;  %v1111_v41 = vld [vmem:[%s2583_s3 + $0x20] sm:$0xff] }
0x1477   :  { %v1039_v1 = vmul.f32 %v1872_v29, %v939_v44  ;;  %v1720_v44 = vpack.c.bf16 %v1112_v42, %v1111_v41 }
0x1479   :  { %1721 = vmatpush3.bf16.msra.mxu0 %v1720_v44 }
0x147a   :  { %1722 = vmatprep.subr.bf16.mxu0 %v1968_v9  ;;  %v1061_v9 = vsel %vm299_vm0, %v2167_v38, %v2317_v55  ;;  %v1065_v38 = vsel %vm299_vm0, %v2296_v15, %v2209_v33  ;;  %v1076_v55 = vrot.slane %v1062_v57, 6  ;;  %v1088_v15 = vrot.slane %v1066_v23, 2 }
0x147b   :  { %v1073_v60 = vrot.slane %v1061_v9, 7  ;;  %v1085_v17 = vrot.slane %v1065_v38, 3 }
0x147d   :  { %1724 = vmatpush3.bf16.msra.mxu0 %v1723_v47 }
0x14d9   :  { %v1025_v28 = vpop.permute.xlu1 %1024 }
0x14da   :  { %v1027_v30 = vmul.f32 %v1870_v27, %v1025_v28  ;;  %v1042_v32 = vpop.permute.xlu0 %1041 }
0x14db   :  { %v1044_v34 = vmul.f32 %v1872_v29, %v1042_v32  ;;  %v2410_v32 = vld [vmem:[%s2585_s5] sm:$0xff]  ;;  %s1973_s5 = smov [#allocation8]  }
0x14dc   :  { %1029 = vrot.lane.b32.xlu1 %v1027_v30, %s1970_s22  ;;  %s1583_s26 = sshll.u32 %s1973_s5, 4  ;;  %s1584_s26 = int_to_ptr.vmem [resolvable:$true] %s1583_s26 }
0x14dd   :  { %1046 = vrot.lane.b32.xlu0 %v1044_v34, %s1970_s22  ;;  %s1911_s27 = scalar_lea.vmem %s1584_s26, 128  ;;  %p1916_p0 = scmp.lt.s32.totalorder %s1584_s26, %s1584_s26 }
0x14de   :  { %p1912_p13 = scmp.ne.s32.totalorder %s1584_s26, %s1911_s27  ;;  %p1917_p1 = scmp.lt.s32.totalorder %s1911_s27, %s1911_s27 }
0x14e0   :  { %p1918_p2 = por %p1917_p1, %p1916_p0 }
0x14e2   :  { %p1919_p3 = pnand %p1918_p2, %p1912_p13 }
0x154e   :  { %v1030_v53 = vpop.permute.xlu1 %1029 }
0x154f   :  { %v1032_v40 = vadd.f32 %v1030_v53, %v1022_v35  ;;  %v1047_v52 = vpop.permute.xlu0 %1046 }
0x1550   :  { %v1049_v2 = vadd.f32 %v1047_v52, %v1039_v1 }
0x1551   :  { %1873 = vtanh.f32 %v1032_v40 }
0x1552   :  { %1875 = vtanh.f32 %v1049_v2 }
0x155b   :  { %v1874_v8 = vpop.eup %1873 }
0x155c   :  { %v1876_v43 = vpop.eup %1875  ;;  %1035 = vrot.lane.b32.xlu1 %v1874_v8, %s1969_s21 }
0x155d   :  { %1052 = vrot.lane.b32.xlu0 %v1876_v43, %s1969_s21 }
0x15ce   :  { %v1036_v51 = vpop.permute.xlu1 %1035 }
0x15cf   :  { %v1038_v54 = vmul.f32 %v1870_v27, %v1036_v51  ;;  %v1053_v56 = vpop.permute.xlu0 %1052 }
0x15d0   :  { %v1055_v36 = vmul.f32 %v1872_v29, %v1053_v56 }
0x15d1   :  { %1068 = vrot.lane.b32.xlu1 %v1038_v54, %s1970_s22 }
0x15d2   :  { %1057 = vrot.lane.b32.xlu0 %v1055_v36, %s1969_s21  ;;  %v1271_v36 = vsub.s32 3, %v2101_v11 }
0x1643   :  { %v1069_v61 = vpop.permute.xlu1 %1068 }
0x1644   :  { %v1058_v62 = vpop.permute.xlu0 %1057  ;;  %v1071_v22 = vsel %vm299_vm0, %v1069_v61, %v2129_v49  ;;  %v2388_v49 = vand.u32 127, %v144_v10 }
0x1645   :  { %v1060_v31 = vsel %vm299_vm0, %v2127_v48, %v1058_v62  ;;  %v1091_v48 = vrot.slane %v1071_v22, 1 }
0x1646   :  { %v1094_v25 = vsel %vm1093_vm3, %v1060_v31, %v1073_v60  ;;  %vm2395_vm11 = vcmp.eq.s32.totalorder %v2101_v11, %v2388_v49 }
0x1647   :  { %v1096_v63 = vsel %vm1095_vm4, %v1094_v25, %v1076_v55 }
0x1648   :  { %v1098_v33 = vsel %vm1097_vm5, %v1096_v63, %v1079_v16 }
0x1649   :  { %v1100_v18 = vsel %vm1099_vm6, %v1098_v33, %v1082_v20  ;;  %v1300_v20 = vsub.s32 4, %v2101_v11 }
0x164a   :  { %v1102_v19 = vsel %vm1101_vm7, %v1100_v18, %v1085_v17 }
0x164b   :  { %v1104_v21 = vsel %vm1103_vm8, %v1102_v19, %v1088_v15 }
0x164c   :  { %v1106_v14 = vsel %vm1105_vm9, %v1104_v21, %v1091_v48 }
0x164d   :  { %1711 = vmatmul.mubr.msk.f32.vlgmr.msra.gmra.mrb[16].mxu0 %vm190_vm1, %v1106_v14 }
0x1720   :  { %v1191_v24 = vpop.f32.mrb[16].mxu0 }
0x1721   :  { %v2391_v26 = vadd.f32 %v1675_v39, %v1191_v24  ;;  %v1712_v13 = vpop.f32.mrb[17].mxu0 }
0x1722   :  { %v1329_v13 = vsub.s32 5, %v2101_v11 }
0x1723   :  { %v1206_v28 = vrot.slane %v2391_v26, %v1205_v37  ;;  %1196 = vst.msk [vmem:[#allocation8] sm:$0xff] %vm1195_vm10, %v2391_v26  ;;  %v1214_v30 = vrot.slane %v2391_v26, %v2104_v12  ;;  %v1243_v7 = vrot.slane %v2391_v26, %v1242_v6  ;;  %v1272_v9 = vrot.slane %v2391_v26, %v1271_v36 }
0x1724   :  { %v1301_v22 = vrot.slane %v2391_v26, %v1300_v20 }
0x1725   :  { %v1207_v10 = vsel %vm2395_vm11, %v1206_v28, 0.0  ;;  %v1330_v28 = vrot.slane %v2391_v26, %v1329_v13 }
0x1726   :  { %v1208_v29 = vsel %vm1195_vm10, %v1207_v10, 0.0 }
0x1727   :  { %1209 = vadd.xlane.f32.xlu0 %v1208_v29 }
0x17b4   :  { %v1210_v34 = vpop.xlane.xlu0 %1209 }
0x17b5   :  { %v1215_v35 = vadd.f32 %v1214_v30, %v1210_v34 }
0x17b7   :  { %v2413_v53 = vadd.f32 %v1215_v35, %v2410_v32 }
0x17b9   :  { %v1217_v1 = vsel %vm1195_vm10, %v2413_v53, -inf }
0x17ba   :  { %v1218_v40 = vrot.slane %v1217_v1, 4 }
0x17bc   :  { %v1219_v52 = vmax.f32 %v1217_v1, %v1218_v40 }
0x17be   :  { %v1220_v2 = vrot.slane %v1219_v52, 2 }
0x17c0   :  { %v1221_v0 = vmax.f32 %v1219_v52, %v1220_v2 }
0x17c2   :  { %v1222_v3 = vrot.slane %v1221_v0, 1 }
0x17c4   :  { %v2417_v4 = vmax.f32 %v1221_v0, %v1222_v3 }
0x17c6   :  { %v1236_v12 = vsel %vm2395_vm11, %v2417_v4, 0.0  ;;  %vm1224_vm12 = vcmp.eq.f32.partialorder %v2413_v53, %v2417_v4 }
0x17c7   :  { %v1237_v5 = vsel %vm1195_vm10, %v1236_v12, 0.0 }
0x17c8   :  { %1238 = vadd.xlane.f32.xlu1 %v1237_v5  ;;  %v1358_v5 = vsub.s32 6, %v2101_v11 }
0x17ca   :  { %v1359_v6 = vrot.slane %v2391_v26, %v1358_v5 }
0x1855   :  { %v1239_v8 = vpop.xlane.xlu1 %1238 }
0x1856   :  { %v1244_v43 = vadd.f32 %v1243_v7, %v1239_v8 }
0x1858   :  { %v2428_v41 = vadd.f32 %v1244_v43, %v2410_v32 }
0x185a   :  { %v1246_v42 = vsel %vm1195_vm10, %v2428_v41, -inf }
0x185b   :  { %v1247_v44 = vrot.slane %v1246_v42, 4 }
0x185d   :  { %v1248_v45 = vmax.f32 %v1246_v42, %v1247_v44 }
0x185f   :  { %v1249_v46 = vrot.slane %v1248_v45, 2 }
0x1861   :  { %v1250_v47 = vmax.f32 %v1248_v45, %v1249_v46 }
0x1863   :  { %v1251_v50 = vrot.slane %v1250_v47, 1 }
0x1865   :  { %v2432_v51 = vmax.f32 %v1250_v47, %v1251_v50 }
0x1867   :  { %v1265_v54 = vsel %vm2395_vm11, %v2432_v51, 0.0  ;;  %vm1253_vm13 = vcmp.eq.f32.partialorder %v2428_v41, %v2432_v51 }
0x1868   :  { %v1266_v56 = vsel %vm1195_vm10, %v1265_v54, 0.0 }
0x1869   :  { %1267 = vadd.xlane.f32.xlu0 %v1266_v56 }
0x18f6   :  { %v1268_v57 = vpop.xlane.xlu0 %1267 }
0x18f7   :  { %v1273_v58 = vadd.f32 %v1272_v9, %v1268_v57  ;;  %v1387_v9 = vsub.s32 7, %v2101_v11 }
0x18f9   :  { %v2443_v59 = vadd.f32 %v1273_v58, %v2410_v32  ;;  %v1388_v57 = vrot.slane %v2391_v26, %v1387_v9 }
0x18fb   :  { %v1275_v60 = vsel %vm1195_vm10, %v2443_v59, -inf }
0x18fc   :  { %v1276_v61 = vrot.slane %v1275_v60, 4 }
0x18fe   :  { %v1277_v62 = vmax.f32 %v1275_v60, %v1276_v61 }
0x1900   :  { %v1278_v38 = vrot.slane %v1277_v62, 2 }
0x1902   :  { %v1279_v55 = vmax.f32 %v1277_v62, %v1278_v38 }
0x1904   :  { %v1280_v31 = vrot.slane %v1279_v55, 1 }
0x1906   :  { %v2447_v16 = vmax.f32 %v1279_v55, %v1280_v31 }
0x1908   :  { %v1294_v23 = vsel %vm2395_vm11, %v2447_v16, 0.0  ;;  %vm1282_vm14 = vcmp.eq.f32.partialorder %v2443_v59, %v2447_v16 }
0x1909   :  { %v1295_v25 = vsel %vm1195_vm10, %v1294_v23, 0.0 }
0x190a   :  { %1296 = vadd.xlane.f32.xlu0 %v1295_v25 }
0x1997   :  { %v1297_v63 = vpop.xlane.xlu0 %1296 }
0x1998   :  { %v1302_v17 = vadd.f32 %v1301_v22, %v1297_v63 }
0x199a   :  { %v2458_v33 = vadd.f32 %v1302_v17, %v2410_v32 }
0x199c   :  { %v1304_v15 = vsel %vm1195_vm10, %v2458_v33, -inf }
0x199d   :  { %v1305_v18 = vrot.slane %v1304_v15, 4 }
0x199f   :  { %v1306_v48 = vmax.f32 %v1304_v15, %v1305_v18 }
0x19a1   :  { %v1307_v19 = vrot.slane %v1306_v48, 2 }
0x19a3   :  { %v1308_v21 = vmax.f32 %v1306_v48, %v1307_v19 }
0x19a5   :  { %v1309_v14 = vrot.slane %v1308_v21, 1 }
0x19a7   :  { %v2462_v39 = vmax.f32 %v1308_v21, %v1309_v14 }
0x19a9   :  { %v1323_v37 = vsel %vm2395_vm11, %v2462_v39, 0.0  ;;  %vm1311_vm15 = vcmp.eq.f32.partialorder %v2458_v33, %v2462_v39 }
0x19aa   :  { %v1324_v24 = vsel %vm1195_vm10, %v1323_v37, 0.0 }
0x19ab   :  { %1325 = vadd.xlane.f32.xlu1 %v1324_v24 }
0x1a38   :  { %v1326_v10 = vpop.xlane.xlu1 %1325 }
0x1a39   :  { %v1331_v29 = vadd.f32 %v1330_v28, %v1326_v10 }
0x1a3b   :  { %v2473_v30 = vadd.f32 %v1331_v29, %v2410_v32 }
0x1a3d   :  { %v1333_v34 = vsel %vm1195_vm10, %v2473_v30, -inf }
0x1a3e   :  { %v1334_v35 = vrot.slane %v1333_v34, 4 }
0x1a40   :  { %v1335_v1 = vmax.f32 %v1333_v34, %v1334_v35 }
0x1a42   :  { %v1336_v40 = vrot.slane %v1335_v1, 2 }
0x1a44   :  { %v1337_v52 = vmax.f32 %v1335_v1, %v1336_v40 }
0x1a46   :  { %v1338_v2 = vrot.slane %v1337_v52, 1 }
0x1a48   :  { %v2477_v0 = vmax.f32 %v1337_v52, %v1338_v2 }
0x1a4a   :  { %v1352_v3 = vsel %vm2395_vm11, %v2477_v0, 0.0  ;;  %vm1340_vm0 = vcmp.eq.f32.partialorder %v2473_v30, %v2477_v0 }
0x1a4b   :  { %v1353_v12 = vsel %vm1195_vm10, %v1352_v3, 0.0 }
0x1a4c   :  { %1354 = vadd.xlane.f32.xlu0 %v1353_v12 }
0x1ad9   :  { %v1355_v7 = vpop.xlane.xlu0 %1354 }
0x1ada   :  { %v1360_v8 = vadd.f32 %v1359_v6, %v1355_v7 }
0x1adc   :  { %v2488_v43 = vadd.f32 %v1360_v8, %v2410_v32 }
0x1ade   :  { %v1362_v42 = vsel %vm1195_vm10, %v2488_v43, -inf }
0x1adf   :  { %v1363_v44 = vrot.slane %v1362_v42, 4 }
0x1ae1   :  { %v1364_v45 = vmax.f32 %v1362_v42, %v1363_v44 }
0x1ae3   :  { %v1365_v46 = vrot.slane %v1364_v45, 2 }
0x1ae5   :  { %v1366_v47 = vmax.f32 %v1364_v45, %v1365_v46 }
0x1ae7   :  { %v1367_v50 = vrot.slane %v1366_v47, 1 }
0x1ae9   :  { %v1368_v54 = vmax.f32 %v1366_v47, %v1367_v50 }
0x1aeb   :  { %v1381_v56 = vsel %vm2395_vm11, %v1368_v54, 0.0  ;;  %vm1369_vm1 = vcmp.eq.f32.partialorder %v2488_v43, %v1368_v54 }
0x1aec   :  { %v1382_v36 = vsel %vm1195_vm10, %v1381_v56, 0.0  ;;  %v1370_v44 = vsel %vm1369_vm1, %v2101_v11, 8 }
0x1aed   :  { %1383 = vadd.xlane.f32.xlu1 %v1382_v36  ;;  %v1371_v45 = vsel %vm1195_vm10, %v1370_v44, 2147483647 }
0x1aee   :  { %v1372_v46 = vrot.slane %v1371_v45, 4 }
0x1af0   :  { %vm1373_vm11 = vcmp.lt.s32.totalorder %v1371_v45, %v1372_v46 }
0x1af1   :  { %v1374_v47 = vsel %vm1373_vm11, %v1371_v45, %v1372_v46 }
0x1af2   :  { %v1375_v50 = vrot.slane %v1374_v47, 2 }
0x1b7a   :  { %v1384_v58 = vpop.xlane.xlu1 %1383 }
0x1b7b   :  { %v1389_v60 = vadd.f32 %v1388_v57, %v1384_v58 }
0x1b7d   :  { %v1390_v61 = vadd.f32 %v1389_v60, %v2410_v32 }
0x1b7f   :  { %v1391_v62 = vsel %vm1195_vm10, %v1390_v61, -inf }
0x1b80   :  { %v1392_v38 = vrot.slane %v1391_v62, 4 }
0x1b82   :  { %v1393_v55 = vmax.f32 %v1391_v62, %v1392_v38 }
0x1b84   :  { %v1394_v31 = vrot.slane %v1393_v55, 2 }
0x1b86   :  { %v1395_v27 = vmax.f32 %v1393_v55, %v1394_v31 }
0x1b88   :  { %v1396_v23 = vrot.slane %v1395_v27, 1 }
0x1b8a   :  { %v1397_v25 = vmax.f32 %v1395_v27, %v1396_v23 }
0x1b8c   :  { %v1410_v20 = vsel %vm1195_vm10, %v1397_v25, -inf  ;;  %vm1398_vm4 = vcmp.eq.f32.partialorder %v1390_v61, %v1397_v25 }
0x1b8d   :  { %1411 = vmax.xlane.f32.xlu0 %v1410_v20  ;;  %v1399_v21 = vsel %vm1398_vm4, %v2101_v11, 8  ;;  %vm1449_vm4 = vcmp.eq.s32.totalorder %v2388_v49, 6 }
0x1b8e   :  { %v1400_v14 = vsel %vm1195_vm10, %v1399_v21, 2147483647 }
0x1b8f   :  { %v1401_v37 = vrot.slane %v1400_v14, 4 }
0x1b91   :  { %vm1402_vm5 = vcmp.lt.s32.totalorder %v1400_v14, %v1401_v37 }
0x1b92   :  { %v1403_v24 = vsel %vm1402_vm5, %v1400_v14, %v1401_v37 }
0x1b93   :  { %v1404_v13 = vrot.slane %v1403_v24, 2 }
0x1b95   :  { %vm1405_vm6 = vcmp.lt.s32.totalorder %v1403_v24, %v1404_v13 }
0x1b96   :  { %v1406_v28 = vsel %vm1405_vm6, %v1403_v24, %v1404_v13 }
0x1b97   :  { %v1407_v29 = vrot.slane %v1406_v28, 1 }
0x1b99   :  { %vm1408_vm7 = vcmp.lt.s32.totalorder %v1406_v28, %v1407_v29 }
0x1b9a   :  { %v1409_v52 = vsel %vm1408_vm7, %v1406_v28, %v1407_v29 }
0x1c1a   :  { %v1412_v22 = vpop.xlane.xlu0 %1411 }
0x1c1b   :  { %vm1413_vm2 = vcmp.eq.f32.partialorder %v1397_v25, %v1412_v22 }
0x1c1c   :  { %v1414_v63 = vsel %vm1413_vm2, %v2388_v49, 8  ;;  %vm1376_vm2 = vcmp.lt.s32.totalorder %v1374_v47, %v1375_v50 }
0x1c1d   :  { %v1415_v26 = vsel %vm1195_vm10, %v1414_v63, 2147483647  ;;  %v1377_v56 = vsel %vm1376_vm2, %v1374_v47, %v1375_v50  ;;  %v1341_v63 = vsel %vm1340_vm0, %v2101_v11, 8 }
0x1c1e   :  { %v1417_v17 = vshra.s32 %v1415_v26, 16  ;;  %v1416_v32 = vand.u32 65535, %v1415_v26  ;;  %v1378_v9 = vrot.slane %v1377_v56, 1  ;;  %v1342_v26 = vsel %vm1195_vm10, %v1341_v63, 2147483647 }
0x1c20   :  { %v1419_v15 = vcvt.s32.f32 %v1417_v17  ;;  %v1418_v48 = vcvt.s32.f32 %v1416_v32  ;;  %vm1379_vm5 = vcmp.lt.s32.totalorder %v1377_v56, %v1378_v9  ;;  %v1343_v17 = vrot.slane %v1342_v26, 4 }
0x1c21   :  { %v1380_v62 = vsel %vm1379_vm5, %v1377_v56, %v1378_v9  ;;  %vm1487_vm5 = vcmp.eq.s32.totalorder %v2388_v49, 4 }
0x1c22   :  { %1420 = vmin.xlane.f32.xlu1 %v1419_v15  ;;  %vm1344_vm7 = vcmp.lt.s32.totalorder %v1342_v26, %v1343_v17 }
0x1caf   :  { %v1421_v18 = vpop.xlane.xlu1 %1420 }
0x1cb0   :  { %vm1422_vm3 = vcmp.eq.f32.partialorder %v1419_v15, %v1421_v18  ;;  %v1427_v10 = vcvt.f32.s32 %v1421_v18  ;;  %v1345_v15 = vsel %vm1344_vm7, %v1342_v26, %v1343_v17 }
0x1cb1   :  { %v1423_v19 = vsel %vm1422_vm3, %v1418_v48, inf  ;;  %vm1430_vm3 = vcmp.eq.s32.totalorder %v2388_v49, 7  ;;  %v1346_v32 = vrot.slane %v1345_v15, 2 }
0x1cb2   :  { %1424 = vmin.xlane.f32.xlu0 %v1423_v19  ;;  %v1428_v35 = vshll.u32 %v1427_v10, 16 }
0x1d3f   :  { %v1425_v34 = vpop.xlane.xlu0 %1424 }
0x1d40   :  { %v1426_v1 = vcvt.f32.s32 %v1425_v34 }
0x1d42   :  { %v1429_v40 = vadd.s32 %v1428_v35, %v1426_v1 }
0x1d44   :  { %vm1432_vm8 = vcmp.eq.s32.totalorder %v2388_v49, %v1429_v40  ;;  %v1431_v54 = vsel %vm1430_vm3, %v1429_v40, 0 }
0x1d45   :  { %v1433_v2 = vsel %vm1432_vm8, %v1409_v52, 8  ;;  %vm1347_vm8 = vcmp.lt.s32.totalorder %v1345_v15, %v1346_v32  ;;  %v1312_v52 = vsel %vm1311_vm15, %v2101_v11, 8 }
0x1d46   :  { %v1434_v3 = vsel %vm1195_vm10, %v1433_v2, 2147483647  ;;  %v1348_v18 = vsel %vm1347_vm8, %v1345_v15, %v1346_v32  ;;  %v1313_v2 = vsel %vm1195_vm10, %v1312_v52, 2147483647 }
0x1d47   :  { %v1436_v12 = vshra.s32 %v1434_v3, 16  ;;  %v1435_v6 = vand.u32 65535, %v1434_v3  ;;  %v1349_v19 = vrot.slane %v1348_v18, 1  ;;  %v1314_v3 = vrot.slane %v1313_v2, 4 }
0x1d49   :  { %v1438_v5 = vcvt.s32.f32 %v1436_v12  ;;  %v1437_v8 = vcvt.s32.f32 %v1435_v6  ;;  %vm1350_vm11 = vcmp.lt.s32.totalorder %v1348_v18, %v1349_v19  ;;  %vm1315_vm3 = vcmp.lt.s32.totalorder %v1313_v2, %v1314_v3 }
0x1d4a   :  { %v1351_v30 = vsel %vm1350_vm11, %v1348_v18, %v1349_v19  ;;  %v1316_v12 = vsel %vm1315_vm3, %v1313_v2, %v1314_v3 }
0x1d4b   :  { %1439 = vmin.xlane.f32.xlu1 %v1438_v5 }
0x1dd8   :  { %v1440_v7 = vpop.xlane.xlu1 %1439 }
0x1dd9   :  { %vm1441_vm9 = vcmp.eq.f32.partialorder %v1438_v5, %v1440_v7  ;;  %v1446_v36 = vcvt.f32.s32 %v1440_v7  ;;  %v1317_v5 = vrot.slane %v1316_v12, 2 }
0x1dda   :  { %v1442_v42 = vsel %vm1441_vm9, %v1437_v8, inf  ;;  %vm1468_vm9 = vcmp.eq.s32.totalorder %v2388_v49, 5 }
0x1ddb   :  { %1443 = vmin.xlane.f32.xlu0 %v1442_v42  ;;  %v1447_v58 = vshll.u32 %v1446_v36, 16 }
0x1e68   :  { %v1444_v57 = vpop.xlane.xlu0 %1443 }
0x1e69   :  { %v1445_v60 = vcvt.f32.s32 %v1444_v57 }
0x1e6b   :  { %v1448_v43 = vadd.s32 %v1447_v58, %v1445_v60 }
0x1e6d   :  { %v1450_v61 = vsel %vm1449_vm4, %v1448_v43, %v1431_v54  ;;  %vm1451_vm1 = vcmp.eq.s32.totalorder %v2388_v49, %v1448_v43  ;;  %vm1318_vm4 = vcmp.lt.s32.totalorder %v1316_v12, %v1317_v5  ;;  %v1283_v43 = vsel %vm1282_vm14, %v2101_v11, 8 }
0x1e6e   :  { %v1452_v38 = vsel %vm1451_vm1, %v1380_v62, 8  ;;  %v1319_v6 = vsel %vm1318_vm4, %v1316_v12, %v1317_v5  ;;  %v1284_v54 = vsel %vm1195_vm10, %v1283_v43, 2147483647 }
0x1e6f   :  { %v1453_v55 = vsel %vm1195_vm10, %v1452_v38, 2147483647  ;;  %v1320_v8 = vrot.slane %v1319_v6, 1 }
0x1e70   :  { %v1455_v31 = vshra.s32 %v1453_v55, 16  ;;  %v1454_v23 = vand.u32 65535, %v1453_v55 }
0x1e71   :  { %vm1321_vm1 = vcmp.lt.s32.totalorder %v1319_v6, %v1320_v8 }
0x1e72   :  { %v1457_v27 = vcvt.s32.f32 %v1455_v31  ;;  %v1456_v20 = vcvt.s32.f32 %v1454_v23  ;;  %v1322_v33 = vsel %vm1321_vm1, %v1319_v6, %v1320_v8 }
0x1e74   :  { %1458 = vmin.xlane.f32.xlu1 %v1457_v27 }
0x1f01   :  { %v1459_v25 = vpop.xlane.xlu1 %1458 }
0x1f02   :  { %vm1460_vm6 = vcmp.eq.f32.partialorder %v1457_v27, %v1459_v25  ;;  %v1465_v48 = vcvt.f32.s32 %v1459_v25 }
0x1f03   :  { %v1461_v22 = vsel %vm1460_vm6, %v1456_v20, inf }
0x1f04   :  { %1462 = vmin.xlane.f32.xlu0 %v1461_v22  ;;  %v1466_v14 = vshll.u32 %v1465_v48, 16 }
0x1f91   :  { %v1463_v21 = vpop.xlane.xlu0 %1462 }
0x1f92   :  { %v1464_v37 = vcvt.f32.s32 %v1463_v21  ;;  %v1254_v21 = vsel %vm1253_vm13, %v2101_v11, 8 }
0x1f94   :  { %v1467_v24 = vadd.s32 %v1466_v14, %v1464_v37  ;;  %v1255_v14 = vsel %vm1195_vm10, %v1254_v21, 2147483647 }
0x1f95   :  { %v1256_v37 = vrot.slane %v1255_v14, 4 }
0x1f96   :  { %v1469_v13 = vsel %vm1468_vm9, %v1467_v24, %v1450_v61  ;;  %vm1470_vm0 = vcmp.eq.s32.totalorder %v2388_v49, %v1467_v24  ;;  %v1285_v61 = vrot.slane %v1284_v54, 4  ;;  %vm1506_vm9 = vcmp.eq.s32.totalorder %v2388_v49, 3 }
0x1f97   :  { %v1471_v0 = vsel %vm1470_vm0, %v1351_v30, 8 }
0x1f98   :  { %v1472_v28 = vsel %vm1195_vm10, %v1471_v0, 2147483647  ;;  %vm1286_vm7 = vcmp.lt.s32.totalorder %v1284_v54, %v1285_v61 }
0x1f99   :  { %v1474_v10 = vshra.s32 %v1472_v28, 16  ;;  %v1473_v34 = vand.u32 65535, %v1472_v28  ;;  %v1287_v62 = vsel %vm1286_vm7, %v1284_v54, %v1285_v61 }
0x1f9a   :  { %v1288_v38 = vrot.slane %v1287_v62, 2 }
0x1f9b   :  { %v1476_v29 = vcvt.s32.f32 %v1474_v10  ;;  %v1475_v1 = vcvt.s32.f32 %v1473_v34 }
0x1f9c   :  { %vm1289_vm8 = vcmp.lt.s32.totalorder %v1287_v62, %v1288_v38 }
0x1f9d   :  { %1477 = vmin.xlane.f32.xlu1 %v1476_v29  ;;  %v1290_v55 = vsel %vm1289_vm8, %v1287_v62, %v1288_v38  ;;  %vm1544_vm8 = vcmp.eq.s32.totalorder %v2388_v49, 1 }
0x1f9e   :  { %v1291_v27 = vrot.slane %v1290_v55, 1 }
0x1fa0   :  { %vm1292_vm11 = vcmp.lt.s32.totalorder %v1290_v55, %v1291_v27 }
0x1fa1   :  { %v1293_v59 = vsel %vm1292_vm11, %v1290_v55, %v1291_v27 }
0x202a   :  { %v1478_v35 = vpop.xlane.xlu1 %1477 }
0x202b   :  { %vm1479_vm2 = vcmp.eq.f32.partialorder %v1476_v29, %v1478_v35  ;;  %v1484_v7 = vcvt.f32.s32 %v1478_v35 }
0x202c   :  { %v1480_v40 = vsel %vm1479_vm2, %v1475_v1, inf  ;;  %vm1257_vm2 = vcmp.lt.s32.totalorder %v1255_v14, %v1256_v37 }
0x202d   :  { %1481 = vmin.xlane.f32.xlu0 %v1480_v40  ;;  %v1485_v44 = vshll.u32 %v1484_v7, 16  ;;  %v1258_v24 = vsel %vm1257_vm2, %v1255_v14, %v1256_v37  ;;  %v1225_v7 = vsel %vm1224_vm12, %v2101_v11, 8 }
0x202e   :  { %v1226_v8 = vsel %vm1195_vm10, %v1225_v7, 2147483647 }
0x20ba   :  { %v1482_v42 = vpop.xlane.xlu0 %1481 }
0x20bb   :  { %v1483_v45 = vcvt.f32.s32 %v1482_v42  ;;  %v1227_v42 = vrot.slane %v1226_v8, 4 }
0x20bd   :  { %v1486_v46 = vadd.s32 %v1485_v44, %v1483_v45 }
0x20bf   :  { %v1488_v47 = vsel %vm1487_vm5, %v1486_v46, %v1469_v13  ;;  %vm1489_vm15 = vcmp.eq.s32.totalorder %v2388_v49, %v1486_v46  ;;  %v1259_v13 = vrot.slane %v1258_v24, 2  ;;  %vm1525_vm5 = vcmp.eq.s32.totalorder %v2388_v49, 2 }
0x20c0   :  { %v1490_v39 = vsel %vm1489_vm15, %v1322_v33, 8  ;;  %vm1228_vm15 = vcmp.lt.s32.totalorder %v1226_v8, %v1227_v42 }
0x20c1   :  { %v1491_v50 = vsel %vm1195_vm10, %v1490_v39, 2147483647  ;;  %vm1260_vm3 = vcmp.lt.s32.totalorder %v1258_v24, %v1259_v13  ;;  %v1229_v44 = vsel %vm1228_vm15, %v1226_v8, %v1227_v42 }
0x20c2   :  { %v1493_v56 = vshra.s32 %v1491_v50, 16  ;;  %v1492_v9 = vand.u32 65535, %v1491_v50  ;;  %v1261_v30 = vsel %vm1260_vm3, %v1258_v24, %v1259_v13  ;;  %v1230_v45 = vrot.slane %v1229_v44, 2 }
0x20c3   :  { %v1262_v28 = vrot.slane %v1261_v30, 1 }
0x20c4   :  { %v1495_v36 = vcvt.s32.f32 %v1493_v56  ;;  %v1494_v58 = vcvt.s32.f32 %v1492_v9 }
0x20c5   :  { %vm1263_vm4 = vcmp.lt.s32.totalorder %v1261_v30, %v1262_v28 }
0x20c6   :  { %1496 = vmin.xlane.f32.xlu1 %v1495_v36  ;;  %v1264_v41 = vsel %vm1263_vm4, %v1261_v30, %v1262_v28 }
0x2153   :  { %v1497_v57 = vpop.xlane.xlu1 %1496 }
0x2154   :  { %vm1498_vm6 = vcmp.eq.f32.partialorder %v1495_v36, %v1497_v57  ;;  %v1503_v31 = vcvt.f32.s32 %v1497_v57 }
0x2155   :  { %v1499_v60 = vsel %vm1498_vm6, %v1494_v58, inf  ;;  %vm1231_vm6 = vcmp.lt.s32.totalorder %v1229_v44, %v1230_v45 }
0x2156   :  { %1500 = vmin.xlane.f32.xlu0 %v1499_v60  ;;  %v1504_v25 = vshll.u32 %v1503_v31, 16  ;;  %v1232_v46 = vsel %vm1231_vm6, %v1229_v44, %v1230_v45 }
0x2157   :  { %v1233_v33 = vrot.slane %v1232_v46, 1 }
0x2159   :  { %vm1234_vm7 = vcmp.lt.s32.totalorder %v1232_v46, %v1233_v33 }
0x215a   :  { %v1235_v11 = vsel %vm1234_vm7, %v1232_v46, %v1233_v33 }
0x21e3   :  { %v1501_v23 = vpop.xlane.xlu0 %1500 }
0x21e4   :  { %v1502_v20 = vcvt.f32.s32 %v1501_v23 }
0x21e6   :  { %v1505_v22 = vadd.s32 %v1504_v25, %v1502_v20 }
0x21e8   :  { %v1507_v63 = vsel %vm1506_vm9, %v1505_v22, %v1488_v47  ;;  %vm1508_vm14 = vcmp.eq.s32.totalorder %v2388_v49, %v1505_v22 }
0x21e9   :  { %v1509_v16 = vsel %vm1508_vm14, %v1293_v59, 8 }
0x21ea   :  { %v1510_v26 = vsel %vm1195_vm10, %v1509_v16, 2147483647 }
0x21eb   :  { %v1512_v17 = vshra.s32 %v1510_v26, 16  ;;  %v1511_v32 = vand.u32 65535, %v1510_v26 }
0x21ed   :  { %v1514_v15 = vcvt.s32.f32 %v1512_v17  ;;  %v1513_v48 = vcvt.s32.f32 %v1511_v32 }
0x21ef   :  { %1515 = vmin.xlane.f32.xlu1 %v1514_v15 }
0x227c   :  { %v1516_v18 = vpop.xlane.xlu1 %1515 }
0x227d   :  { %vm1517_vm0 = vcmp.eq.f32.partialorder %v1514_v15, %v1516_v18  ;;  %v1522_v0 = vcvt.f32.s32 %v1516_v18 }
0x227e   :  { %v1518_v19 = vsel %vm1517_vm0, %v1513_v48, inf }
0x227f   :  { %1519 = vmin.xlane.f32.xlu0 %v1518_v19  ;;  %v1523_v29 = vshll.u32 %v1522_v0, 16 }
0x230c   :  { %v1520_v10 = vpop.xlane.xlu0 %1519 }
0x230d   :  { %v1521_v34 = vcvt.f32.s32 %v1520_v10 }
0x230f   :  { %v1524_v35 = vadd.s32 %v1523_v29, %v1521_v34 }
0x2311   :  { %vm1527_vm1 = vcmp.eq.s32.totalorder %v2388_v49, %v1524_v35  ;;  %v1526_v51 = vsel %vm1525_vm5, %v1524_v35, %v1507_v63 }
0x2312   :  { %v1528_v1 = vsel %vm1527_vm1, %v1264_v41, 8 }
0x2313   :  { %v1529_v40 = vsel %vm1195_vm10, %v1528_v1, 2147483647 }
0x2314   :  { %v1531_v52 = vshra.s32 %v1529_v40, 16  ;;  %v1530_v3 = vand.u32 65535, %v1529_v40 }
0x2316   :  { %v1533_v2 = vcvt.s32.f32 %v1531_v52  ;;  %v1532_v5 = vcvt.s32.f32 %v1530_v3 }
0x2318   :  { %1534 = vmin.xlane.f32.xlu1 %v1533_v2 }
0x23a5   :  { %v1535_v12 = vpop.xlane.xlu1 %1534 }
0x23a6   :  { %vm1536_vm13 = vcmp.eq.f32.partialorder %v1533_v2, %v1535_v12  ;;  %v1541_v47 = vcvt.f32.s32 %v1535_v12 }
0x23a7   :  { %v1537_v6 = vsel %vm1536_vm13, %v1532_v5, inf }
0x23a8   :  { %1538 = vmin.xlane.f32.xlu0 %v1537_v6  ;;  %v1542_v50 = vshll.u32 %v1541_v47, 16 }
0x2435   :  { %v1539_v39 = vpop.xlane.xlu0 %1538 }
0x2436   :  { %v1540_v56 = vcvt.f32.s32 %v1539_v39 }
0x2438   :  { %v1543_v36 = vadd.s32 %v1542_v50, %v1540_v56 }
0x243a   :  { %vm1546_vm9 = vcmp.eq.s32.totalorder %v2388_v49, %v1543_v36  ;;  %v1545_v53 = vsel %vm1544_vm8, %v1543_v36, %v1526_v51 }
0x243b   :  { %v1547_v4 = vsel %vm1546_vm9, %v1235_v11, 8 }
0x243c   :  { %v1548_v9 = vsel %vm1195_vm10, %v1547_v4, 2147483647 }
0x243d   :  { %v1550_v57 = vshra.s32 %v1548_v9, 16  ;;  %v1549_v60 = vand.u32 65535, %v1548_v9 }
0x243f   :  { %v1552_v58 = vcvt.s32.f32 %v1550_v57  ;;  %v1551_v54 = vcvt.s32.f32 %v1549_v60 }
0x2441   :  { %1553 = vmin.xlane.f32.xlu1 %v1552_v58 }
0x24ce   :  { %v1554_v43 = vpop.xlane.xlu1 %1553 }
0x24cf   :  { %vm1555_vm12 = vcmp.eq.f32.partialorder %v1552_v58, %v1554_v43 }
0x24d0   :  { %v1556_v61 = vsel %vm1555_vm12, %v1551_v54, inf }
0x24d1   :  { %1557 = vmin.xlane.f32.xlu0 %v1556_v61 }
0x24d2   :  { %1922 = shalt.err (!%p1919_p3)
}
0x24d3   :  { %s1923_s30 = scalar_lea.hbm %s2587_s7, 128 }
0x24d4   :  { %p1924_p4 = scmp.ne.s32.totalorder %s2587_s7, %s1923_s30  ;;  %p1927_p5 = scmp.lt.u32.totalorder %s1923_s30, %s2587_s7 }
0x24d6   :  { %p1929_p6 = pnand %p1927_p5, %p1924_p4 }
0x24d8   :  { %1932 = shalt.err (!%p1929_p6)
}
0x24d9   :  { %1586 = dma.vmem_to_hbm [thread:$0]  %s1584_s26, 128, %s2587_s7, [#allocation9]   ;;  %v1560_v62 = vcvt.f32.s32 %v1554_v43  ;;  %vm1563_vm10 = vcmp.eq.s32.totalorder %v2388_v49, 0  ;;  %vm1565_vm11 = vcmask 57344  }
0x24da   :  { %s1974_s0 = smov [#allocation7]  }
0x24db   :  { %v1561_v55 = vshll.u32 %v1560_v62, 16  ;;  %s1573_s13 = sshll.u32 %s1974_s0, 4  ;;  %s1574_s13 = int_to_ptr.vmem [resolvable:$true] %s1573_s13 }
0x24dc   :  { %s1933_s14 = scalar_lea.vmem %s1574_s13, 16  ;;  %s1937_s15 = scalar_lea.vmem %s1574_s13, 32 }
0x24dd   :  { %p1934_p7 = scmp.ne.s32.totalorder %s1574_s13, %s1933_s14  ;;  %p1938_p8 = scmp.lt.s32.totalorder %s1574_s13, %s1574_s13 }
0x24de   :  { %p1939_p9 = scmp.lt.s32.totalorder %s1937_s15, %s1933_s14 }
0x24e0   :  { %p1940_p10 = por %p1939_p9, %p1938_p8 }
0x24e2   :  { %p1941_p11 = pnand %p1940_p10, %p1934_p7 }
0x255e   :  { %v1558_v38 = vpop.xlane.xlu0 %1557 }
0x255f   :  { %v1559_v31 = vcvt.f32.s32 %v1558_v38 }
0x2561   :  { %v1562_v27 = vadd.s32 %v1561_v55, %v1559_v31 }
0x2563   :  { %v1564_v23 = vsel %vm1563_vm10, %v1562_v27, %v1545_v53 }
0x2564   :  { %1566 = vst.msk [vmem:[#allocation7] sm:$0x1] %vm1565_vm11, %v1564_v23 }
0x2565   :  { %1944 = shalt.err (!%p1941_p11)
}
0x2566   :  { %s1945_s17 = scalar_lea.hbm %s2586_s6, 16 }
0x2567   :  { %p1946_p12 = scmp.ne.s32.totalorder %s2586_s6, %s1945_s17  ;;  %p1949_p13 = scmp.lt.u32.totalorder %s1945_s17, %s2586_s6 }
0x2569   :  { %p1951_p0 = pnand %p1949_p13, %p1946_p12 }
0x256b   :  { %1954 = shalt.err (!%p1951_p0)
}
0x256c   :  { %1576 = dma.vmem_to_hbm [thread:$0]  %s1574_s13, 16, %s2586_s6, [#allocation4]  }
0x256d   :  { %1959 = dma.done.wait [#allocation4], 16  }
0x256e   :  { %1960 = vsyncadd [#allocation4], 4294967280 }
0x256f   :  { %1961 = dma.done.wait [#allocation9], 128  }
0x2570   :  { %1962 = vsyncadd [#allocation9], 4294967168 }
0x2571   :  { %1593 = vsyncpa [#allocation3], 1 }
0x2572   :  { %1594 = vsyncpa [#allocation4], 1 }
0x2573   :  { %1595 = vsyncpa [#allocation9], 1 }
0x2574   :  { %1596 = vsyncpa [#allocation5], 1 }

</bundles_post_ra>
